<compile_context>
chip_gen: v7x
topology: tpu7x:2x2x1
jax: 0.10.0
libtpu: 0.0.40
codegen_flags: <defaults>
</compile_context>

<pallas_src>
import jax
import jax.numpy as jnp
from jax import lax
from jax.experimental import pallas as pl
from jax.experimental.pallas import tpu as pltpu

EMBED_DIM = 384    # embedding_dim from the module
HIDDEN_DIM = 384   # hidden_dim from the module
_MAX_TILE = 1024   # batch rows per grid step
_EPS = 1e-12       # F.normalize eps


def _round_up(x, m):
    return (x + m - 1) // m * m


def _cdiv(a, b):
    return -(-a // b)


def _dual_tower_kernel(x_ref, w1_ref, b1_ref, w2_ref, b2_ref, w3_ref, b3_ref,
                       o_ref):
    """One batch-tile grid point: all T towers, 3x (Linear+ReLU), L2 normalize.

    x_ref:   (tile, D)      bf16
    w1_ref:  (D, T*H)       bf16   (layer-1 weights of all towers, concatenated)
    b1_ref:  (1, T*H)       f32
    w2_ref:  (T, H, H)      bf16
    b2_ref:  (T, 1, H)      f32
    w3_ref:  (T, H, H)      bf16
    b3_ref:  (T, 1, H)      f32
    o_ref:   (T, tile, H)   out dtype (bf16 by default)
    """
    T = o_ref.shape[0]
    H = o_ref.shape[2]

    x = x_ref[...]

    # Layer 1 for ALL towers in one matmul: N = T*H (= 768 for the dual tower),
    # an exact multiple of the 256-wide MXU.  Dropout(0.1) -> identity (eval).
    h_all = jnp.dot(x, w1_ref[...], preferred_element_type=jnp.float32)
    h_all = jnp.maximum(h_all + b1_ref[...], 0.0)

    # Static unroll over towers (T is 1 or 2).
    for t in range(T):
        h = h_all[:, t * H:(t + 1) * H].astype(jnp.bfloat16)

        # Linear(hidden, hidden) + ReLU   (Dropout(0.05) -> identity, eval)
        h = jnp.dot(h, w2_ref[t], preferred_element_type=jnp.float32) + b2_ref[t]
        h = jnp.maximum(h, 0.0)

        # Linear(hidden, hidden) + ReLU
        h = jnp.dot(h.astype(jnp.bfloat16), w3_ref[t],
                    preferred_element_type=jnp.float32) + b3_ref[t]
        h = jnp.maximum(h, 0.0)

        # F.normalize(p=2, dim=1): x / max(||x||, eps) == x * rsqrt(max(sumsq, eps^2))
        # Normalization stays in f32; only the final store narrows.
        sumsq = jnp.sum(h * h, axis=1, keepdims=True)
        inv = lax.rsqrt(jnp.maximum(sumsq, _EPS * _EPS))
        o_ref[t] = (h * inv).astype(o_ref.dtype)


def _run_towers(x, towers_params, out_dtype=jnp.bfloat16):
    """Run T towers over embeddings x: [B, D] -> [T, B, H].

    towers_params: list of per-tower tuples (w1, b1, w2, b2, w3, b3) with
    weights in [in, out] layout and biases in [1, out].
    """
    T = len(towers_params)
    B, D = x.shape
    assert D == EMBED_DIM
    H = HIDDEN_DIM

    # Layer-1 weights concatenated along the output dim (one wide matmul);
    # layers 2/3 stacked along a leading tower axis.  bf16 matmul operands,
    # f32 biases (accumulation/bias/ReLU/normalize happen in f32 in-kernel).
    w1c = jnp.concatenate([p[0] for p in towers_params], axis=1).astype(jnp.bfloat16)
    b1c = jnp.concatenate([p[1] for p in towers_params], axis=1)
    w2s = jnp.stack([p[2] for p in towers_params]).astype(jnp.bfloat16)
    b2s = jnp.stack([p[3] for p in towers_params])
    w3s = jnp.stack([p[4] for p in towers_params]).astype(jnp.bfloat16)
    b3s = jnp.stack([p[5] for p in towers_params])

    # Remainder-aware batch tiling.  Tile is a multiple of 16 (bf16 min tile);
    # >= 2 grid steps for v7x's two TensorCores once the batch is big enough.
    Bp = _round_up(B, 16)
    num_steps = _cdiv(Bp, _MAX_TILE)
    if Bp >= 32:
        num_steps = max(num_steps, 2)
    tile = _round_up(_cdiv(Bp, num_steps), 16)
    Bp = num_steps * tile
    if Bp != B:
        x = jnp.pad(x, ((0, Bp - B), (0, 0)))
    xb = x.astype(jnp.bfloat16)

    resident = lambda i: (0, 0, 0)   # same block every step -> stays in VMEM

    out = pl.pallas_call(
        _dual_tower_kernel,
        out_shape=jax.ShapeDtypeStruct((T, Bp, H), out_dtype),
        grid_spec=pltpu.PrefetchScalarGridSpec(
            num_scalar_prefetch=0,
            grid=(num_steps,),
            in_specs=[
                pl.BlockSpec((tile, D), lambda i: (i, 0)),     # x batch tile
                pl.BlockSpec((D, T * H), lambda i: (0, 0)),    # w1 (concat)
                pl.BlockSpec((1, T * H), lambda i: (0, 0)),    # b1 (concat)
                pl.BlockSpec((T, H, H), resident),             # w2 (stacked)
                pl.BlockSpec((T, 1, H), resident),             # b2
                pl.BlockSpec((T, H, H), resident),             # w3
                pl.BlockSpec((T, 1, H), resident),             # b3
            ],
            out_specs=pl.BlockSpec((T, tile, H), lambda i: (0, i, 0)),
        ),
        compiler_params=pltpu.CompilerParams(
            dimension_semantics=("parallel",)),
    )(xb, w1c, b1c, w2s, b2s, w3s, b3s)

    if Bp != B:
        out = out[:, :B, :]   # only when padding was required
    return out


def tower_forward(x, params, out_dtype=jnp.bfloat16):
    """Single FC tower + L2 normalization on embeddings x: [B, EMBED_DIM]."""
    return _run_towers(x, [params], out_dtype=out_dtype)[0]


def dual_tower_forward_both(x, query_params, doc_params, out_dtype=jnp.bfloat16):
    """Run BOTH towers in one fused pallas_call. Returns (query_out, doc_out)."""
    out = _run_towers(x, [query_params, doc_params], out_dtype=out_dtype)
    return out[0], out[1]


def dual_tower_forward(embeddings, query_params, doc_params, tower_type="query",
                       out_dtype=jnp.bfloat16):
    """Mirrors DualTowerWithFC.forward, starting from precomputed embeddings."""
    # TODO(synk): SentenceTransformer.encode() (the text encoder) is an external
    # pretrained transformer and is not reimplemented; embeddings are inputs.
    if tower_type == "query":
        return tower_forward(embeddings, query_params, out_dtype=out_dtype)
    elif tower_type == "doc":
        return tower_forward(embeddings, doc_params, out_dtype=out_dtype)
    else:
        # No FC tower applied; reference still L2-normalizes.
        n = jnp.maximum(
            jnp.sqrt(jnp.sum(embeddings * embeddings, axis=1, keepdims=True)),
            _EPS)
        return (embeddings / n).astype(out_dtype)


def init_tower_params(key, in_dim, hidden_dim):
    """Deterministic init mimicking nn.Linear default (uniform +/- 1/sqrt(fan_in)).
    Weights are stored already transposed: shape [in, out]; biases [1, out]."""
    keys = jax.random.split(key, 6)
    dims = [(in_dim, hidden_dim), (hidden_dim, hidden_dim), (hidden_dim, hidden_dim)]
    params = []
    for li, (fi, fo) in enumerate(dims):
        bound = 1.0 / jnp.sqrt(fi)
        w = jax.random.uniform(keys[2 * li], (fi, fo), jnp.float32, -bound, bound)
        b = jax.random.uniform(keys[2 * li + 1], (1, fo), jnp.float32, -bound, bound)
        params += [w, b]
    return tuple(params)


def _reference(x, params):
    """Plain-JAX f32 reference for correctness check."""
    w1, b1, w2, b2, w3, b3 = params
    h = jnp.maximum(x @ w1 + b1, 0.0)
    h = jnp.maximum(h @ w2 + b2, 0.0)
    h = jnp.maximum(h @ w3 + b3, 0.0)
    n = jnp.maximum(jnp.sqrt(jnp.sum(h * h, axis=1, keepdims=True)), _EPS)
    return h / n


if __name__ == "__main__":
    key = jax.random.PRNGKey(0)
    k_x, k_q, k_d = jax.random.split(key, 3)

    batch = 8
    # "embeddings" as produced by the sentence encoder: [B, 384]
    embeddings = jax.random.normal(k_x, (batch, EMBED_DIM), jnp.float32)

    query_params = init_tower_params(k_q, EMBED_DIM, HIDDEN_DIM)
    doc_params = init_tower_params(k_d, EMBED_DIM, HIDDEN_DIM)

    # Fused dual-tower call (both towers in a single pallas_call).
    out_q, out_d = dual_tower_forward_both(embeddings, query_params, doc_params)
    # Module-equivalent single-tower paths.
    out_q1 = dual_tower_forward(embeddings, query_params, doc_params, "query")
    out_d1 = dual_tower_forward(embeddings, query_params, doc_params, "doc")
    jax.block_until_ready((out_q, out_d, out_q1, out_d1))

    # Correctness vs. plain-JAX f32 reference (relaxed tolerance: bf16 path).
    ref_q = _reference(embeddings, query_params)
    ref_d = _reference(embeddings, doc_params)
    out_q_f = out_q.astype(jnp.float32)
    out_d_f = out_d.astype(jnp.float32)
    assert jnp.allclose(out_q_f, ref_q, atol=3e-2, rtol=3e-2)
    assert jnp.allclose(out_d_f, ref_d, atol=3e-2, rtol=3e-2)
    # Fused (T=2) and single-tower (T=1) paths should agree (same accumulation order).
    assert jnp.allclose(out_q1.astype(jnp.float32), out_q_f, atol=5e-3)
    assert jnp.allclose(out_d1.astype(jnp.float32), out_d_f, atol=5e-3)
    # Rows must be (near-)unit-norm; normalization happens in f32, store is bf16.
    assert jnp.allclose(jnp.linalg.norm(out_q_f, axis=1), 1.0, atol=5e-3)
    assert jnp.allclose(jnp.linalg.norm(out_d_f, axis=1), 1.0, atol=5e-3)

    print("KERNEL_OK")
</pallas_src>

<mosaic_0001>
module attributes {stable_mosaic.version = 11 : i64} {
  func.func @_dual_tower_kernel(%arg0: i32, %arg1: memref<16x384xbf16, #tpu.memory_space<vmem>>, %arg2: memref<384x768xbf16, #tpu.memory_space<vmem>>, %arg3: memref<1x768xf32, #tpu.memory_space<vmem>>, %arg4: memref<2x384x384xbf16, #tpu.memory_space<vmem>>, %arg5: memref<2x1x384xf32, #tpu.memory_space<vmem>>, %arg6: memref<2x384x384xbf16, #tpu.memory_space<vmem>>, %arg7: memref<2x1x384xf32, #tpu.memory_space<vmem>>, %arg8: memref<2x16x384xbf16, #tpu.memory_space<vmem>>) attributes {dimension_semantics = [#tpu.dimension_semantics<parallel>], iteration_bounds = array<i64: 1>, scalar_prefetch = 0 : i64, scratch_operands = 0 : i64, tpu.core_type = #tpu.core_type<tc>, window_params = [{transform_indices = @transform_0, window_bounds = array<i64: 16, 384>}, {pipeline_mode = #tpu.pipeline_mode<synchronous>, transform_indices = @transform_1, window_bounds = array<i64: 384, 768>}, {pipeline_mode = #tpu.pipeline_mode<synchronous>, transform_indices = @transform_2, window_bounds = array<i64: 1, 768>}, {pipeline_mode = #tpu.pipeline_mode<synchronous>, transform_indices = @transform_3, window_bounds = array<i64: 2, 384, 384>}, {pipeline_mode = #tpu.pipeline_mode<synchronous>, transform_indices = @transform_4, window_bounds = array<i64: 2, 1, 384>}, {pipeline_mode = #tpu.pipeline_mode<synchronous>, transform_indices = @transform_5, window_bounds = array<i64: 2, 384, 384>}, {pipeline_mode = #tpu.pipeline_mode<synchronous>, transform_indices = @transform_6, window_bounds = array<i64: 2, 1, 384>}, {transform_indices = @transform_7, window_bounds = array<i64: 2, 16, 384>}]} {
    %c0 = arith.constant 0 : index
    %c0_0 = arith.constant 0 : index
    %0 = vector.load %arg1[%c0, %c0_0] : memref<16x384xbf16, #tpu.memory_space<vmem>>, vector<16x384xbf16>
    %c0_1 = arith.constant 0 : index
    %c0_2 = arith.constant 0 : index
    %1 = vector.load %arg2[%c0_1, %c0_2] : memref<384x768xbf16, #tpu.memory_space<vmem>>, vector<384x768xbf16>
    %cst = arith.constant dense<0.000000e+00> : vector<16x768xf32>
    %2 = tpu.matmul %0, %1, %cst {dimension_numbers = #tpu.dot_dimension_numbers<[1], [0], [0], [1], [0, 0, 1, 1], [], []>} : vector<16x384xbf16>, vector<384x768xbf16>, vector<16x768xf32> -> vector<16x768xf32>
    %c0_3 = arith.constant 0 : index
    %c0_4 = arith.constant 0 : index
    %3 = vector.load %arg3[%c0_3, %c0_4] : memref<1x768xf32, #tpu.memory_space<vmem>>, vector<1x768xf32>
    %4 = vector.broadcast %3 : vector<1x768xf32> to vector<16x768xf32>
    %5 = arith.addf %2, %4 : vector<16x768xf32>
    %cst_5 = arith.constant 0.000000e+00 : f32
    %6 = vector.broadcast %cst_5 : f32 to vector<16x768xf32>
    %7 = arith.maximumf %5, %6 : vector<16x768xf32>
    %8 = vector.extract_strided_slice %7 {offsets = [0, 0], sizes = [16, 384], strides = [1, 1]} : vector<16x768xf32> to vector<16x384xf32>
    %9 = arith.truncf %8 : vector<16x384xf32> to vector<16x384xbf16>
    %c0_6 = arith.constant 0 : index
    %c0_7 = arith.constant 0 : index
    %c0_8 = arith.constant 0 : index
    %10 = vector.load %arg4[%c0_6, %c0_7, %c0_8] : memref<2x384x384xbf16, #tpu.memory_space<vmem>>, vector<1x384x384xbf16>
    %11 = vector.shape_cast %10 : vector<1x384x384xbf16> to vector<384x384xbf16>
    %cst_9 = arith.constant dense<0.000000e+00> : vector<16x384xf32>
    %12 = tpu.matmul %9, %11, %cst_9 {dimension_numbers = #tpu.dot_dimension_numbers<[1], [0], [0], [1], [0, 0, 1, 1], [], []>} : vector<16x384xbf16>, vector<384x384xbf16>, vector<16x384xf32> -> vector<16x384xf32>
    %c0_10 = arith.constant 0 : index
    %c0_11 = arith.constant 0 : index
    %c0_12 = arith.constant 0 : index
    %13 = vector.load %arg5[%c0_10, %c0_11, %c0_12] : memref<2x1x384xf32, #tpu.memory_space<vmem>>, vector<1x1x384xf32>
    %14 = vector.shape_cast %13 : vector<1x1x384xf32> to vector<1x384xf32>
    %15 = vector.broadcast %14 : vector<1x384xf32> to vector<16x384xf32>
    %16 = arith.addf %12, %15 : vector<16x384xf32>
    %cst_13 = arith.constant 0.000000e+00 : f32
    %17 = vector.broadcast %cst_13 : f32 to vector<16x384xf32>
    %18 = arith.maximumf %16, %17 : vector<16x384xf32>
    %19 = arith.truncf %18 : vector<16x384xf32> to vector<16x384xbf16>
    %c0_14 = arith.constant 0 : index
    %c0_15 = arith.constant 0 : index
    %c0_16 = arith.constant 0 : index
    %20 = vector.load %arg6[%c0_14, %c0_15, %c0_16] : memref<2x384x384xbf16, #tpu.memory_space<vmem>>, vector<1x384x384xbf16>
    %21 = vector.shape_cast %20 : vector<1x384x384xbf16> to vector<384x384xbf16>
    %cst_17 = arith.constant dense<0.000000e+00> : vector<16x384xf32>
    %22 = tpu.matmul %19, %21, %cst_17 {dimension_numbers = #tpu.dot_dimension_numbers<[1], [0], [0], [1], [0, 0, 1, 1], [], []>} : vector<16x384xbf16>, vector<384x384xbf16>, vector<16x384xf32> -> vector<16x384xf32>
    %c0_18 = arith.constant 0 : index
    %c0_19 = arith.constant 0 : index
    %c0_20 = arith.constant 0 : index
    %23 = vector.load %arg7[%c0_18, %c0_19, %c0_20] : memref<2x1x384xf32, #tpu.memory_space<vmem>>, vector<1x1x384xf32>
    %24 = vector.shape_cast %23 : vector<1x1x384xf32> to vector<1x384xf32>
    %25 = vector.broadcast %24 : vector<1x384xf32> to vector<16x384xf32>
    %26 = arith.addf %22, %25 : vector<16x384xf32>
    %cst_21 = arith.constant 0.000000e+00 : f32
    %27 = vector.broadcast %cst_21 : f32 to vector<16x384xf32>
    %28 = arith.maximumf %26, %27 : vector<16x384xf32>
    %29 = arith.mulf %28, %28 : vector<16x384xf32>
    %cst_22 = arith.constant dense<0.000000e+00> : vector<16xf32>
    %30 = vector.multi_reduction <add>, %29, %cst_22 [1] : vector<16x384xf32> to vector<16xf32>
    %31 = vector.shape_cast %30 : vector<16xf32> to vector<16x1xf32>
    %cst_23 = arith.constant 1.000000e-24 : f32
    %32 = vector.broadcast %cst_23 : f32 to vector<16x1xf32>
    %33 = arith.maximumf %31, %32 : vector<16x1xf32>
    %34 = math.rsqrt %33 : vector<16x1xf32>
    %35 = vector.broadcast %34 : vector<16x1xf32> to vector<16x384xf32>
    %36 = arith.mulf %28, %35 : vector<16x384xf32>
    %37 = arith.truncf %36 : vector<16x384xf32> to vector<16x384xbf16>
    %c0_24 = arith.constant 0 : index
    %c0_25 = arith.constant 0 : index
    %c0_26 = arith.constant 0 : index
    %38 = vector.load %arg8[%c0_24, %c0_25, %c0_26] : memref<2x16x384xbf16, #tpu.memory_space<vmem>>, vector<1x16x384xbf16>
    %39 = vector.shape_cast %38 : vector<1x16x384xbf16> to vector<16x384xbf16>
    %40 = vector.shape_cast %37 : vector<16x384xbf16> to vector<1x16x384xbf16>
    tpu.vector_store %arg8[%c0_24, %c0_25, %c0_26], %40 {strides = array<i32>} : memref<2x16x384xbf16, #tpu.memory_space<vmem>>, vector<1x16x384xbf16>,
    %41 = vector.extract_strided_slice %7 {offsets = [0, 384], sizes = [16, 384], strides = [1, 1]} : vector<16x768xf32> to vector<16x384xf32>
    %42 = arith.truncf %41 : vector<16x384xf32> to vector<16x384xbf16>
    %c1 = arith.constant 1 : index
    %c0_27 = arith.constant 0 : index
    %c0_28 = arith.constant 0 : index
    %43 = vector.load %arg4[%c1, %c0_27, %c0_28] : memref<2x384x384xbf16, #tpu.memory_space<vmem>>, vector<1x384x384xbf16>
    %44 = vector.shape_cast %43 : vector<1x384x384xbf16> to vector<384x384xbf16>
    %cst_29 = arith.constant dense<0.000000e+00> : vector<16x384xf32>
    %45 = tpu.matmul %42, %44, %cst_29 {dimension_numbers = #tpu.dot_dimension_numbers<[1], [0], [0], [1], [0, 0, 1, 1], [], []>} : vector<16x384xbf16>, vector<384x384xbf16>, vector<16x384xf32> -> vector<16x384xf32>
    %c1_30 = arith.constant 1 : index
    %c0_31 = arith.constant 0 : index
    %c0_32 = arith.constant 0 : index
    %46 = vector.load %arg5[%c1_30, %c0_31, %c0_32] : memref<2x1x384xf32, #tpu.memory_space<vmem>>, vector<1x1x384xf32>
    %47 = vector.shape_cast %46 : vector<1x1x384xf32> to vector<1x384xf32>
    %48 = vector.broadcast %47 : vector<1x384xf32> to vector<16x384xf32>
    %49 = arith.addf %45, %48 : vector<16x384xf32>
    %cst_33 = arith.constant 0.000000e+00 : f32
    %50 = vector.broadcast %cst_33 : f32 to vector<16x384xf32>
    %51 = arith.maximumf %49, %50 : vector<16x384xf32>
    %52 = arith.truncf %51 : vector<16x384xf32> to vector<16x384xbf16>
    %c1_34 = arith.constant 1 : index
    %c0_35 = arith.constant 0 : index
    %c0_36 = arith.constant 0 : index
    %53 = vector.load %arg6[%c1_34, %c0_35, %c0_36] : memref<2x384x384xbf16, #tpu.memory_space<vmem>>, vector<1x384x384xbf16>
    %54 = vector.shape_cast %53 : vector<1x384x384xbf16> to vector<384x384xbf16>
    %cst_37 = arith.constant dense<0.000000e+00> : vector<16x384xf32>
    %55 = tpu.matmul %52, %54, %cst_37 {dimension_numbers = #tpu.dot_dimension_numbers<[1], [0], [0], [1], [0, 0, 1, 1], [], []>} : vector<16x384xbf16>, vector<384x384xbf16>, vector<16x384xf32> -> vector<16x384xf32>
    %c1_38 = arith.constant 1 : index
    %c0_39 = arith.constant 0 : index
    %c0_40 = arith.constant 0 : index
    %56 = vector.load %arg7[%c1_38, %c0_39, %c0_40] : memref<2x1x384xf32, #tpu.memory_space<vmem>>, vector<1x1x384xf32>
    %57 = vector.shape_cast %56 : vector<1x1x384xf32> to vector<1x384xf32>
    %58 = vector.broadcast %57 : vector<1x384xf32> to vector<16x384xf32>
    %59 = arith.addf %55, %58 : vector<16x384xf32>
    %cst_41 = arith.constant 0.000000e+00 : f32
    %60 = vector.broadcast %cst_41 : f32 to vector<16x384xf32>
    %61 = arith.maximumf %59, %60 : vector<16x384xf32>
    %62 = arith.mulf %61, %61 : vector<16x384xf32>
    %cst_42 = arith.constant dense<0.000000e+00> : vector<16xf32>
    %63 = vector.multi_reduction <add>, %62, %cst_42 [1] : vector<16x384xf32> to vector<16xf32>
    %64 = vector.shape_cast %63 : vector<16xf32> to vector<16x1xf32>
    %cst_43 = arith.constant 1.000000e-24 : f32
    %65 = vector.broadcast %cst_43 : f32 to vector<16x1xf32>
    %66 = arith.maximumf %64, %65 : vector<16x1xf32>
    %67 = math.rsqrt %66 : vector<16x1xf32>
    %68 = vector.broadcast %67 : vector<16x1xf32> to vector<16x384xf32>
    %69 = arith.mulf %61, %68 : vector<16x384xf32>
    %70 = arith.truncf %69 : vector<16x384xf32> to vector<16x384xbf16>
    %c1_44 = arith.constant 1 : index
    %c0_45 = arith.constant 0 : index
    %c0_46 = arith.constant 0 : index
    %71 = vector.load %arg8[%c1_44, %c0_45, %c0_46] : memref<2x16x384xbf16, #tpu.memory_space<vmem>>, vector<1x16x384xbf16>
    %72 = vector.shape_cast %71 : vector<1x16x384xbf16> to vector<16x384xbf16>
    %73 = vector.shape_cast %70 : vector<16x384xbf16> to vector<1x16x384xbf16>
    tpu.vector_store %arg8[%c1_44, %c0_45, %c0_46], %73 {strides = array<i32>} : memref<2x16x384xbf16, #tpu.memory_space<vmem>>, vector<1x16x384xbf16>,
    return
  }
  func.func @transform_0(%arg0: i32) -> (i32, i32) {
    %c0_i32 = arith.constant 0 : i32
    %c0_i32_0 = arith.constant 0 : i32
    return %arg0, %c0_i32 : i32, i32
  }
  func.func @transform_1(%arg0: i32) -> (i32, i32) {
    %c0_i32 = arith.constant 0 : i32
    %c0_i32_0 = arith.constant 0 : i32
    %c0_i32_1 = arith.constant 0 : i32
    return %c0_i32, %c0_i32_0 : i32, i32
  }
  func.func @transform_2(%arg0: i32) -> (i32, i32) {
    %c0_i32 = arith.constant 0 : i32
    %c0_i32_0 = arith.constant 0 : i32
    %c0_i32_1 = arith.constant 0 : i32
    return %c0_i32, %c0_i32_0 : i32, i32
  }
  func.func @transform_3(%arg0: i32) -> (i32, i32, i32) {
    %c0_i32 = arith.constant 0 : i32
    %c0_i32_0 = arith.constant 0 : i32
    %c0_i32_1 = arith.constant 0 : i32
    %c0_i32_2 = arith.constant 0 : i32
    return %c0_i32, %c0_i32_0, %c0_i32_1 : i32, i32, i32
  }
  func.func @transform_4(%arg0: i32) -> (i32, i32, i32) {
    %c0_i32 = arith.constant 0 : i32
    %c0_i32_0 = arith.constant 0 : i32
    %c0_i32_1 = arith.constant 0 : i32
    %c0_i32_2 = arith.constant 0 : i32
    return %c0_i32, %c0_i32_0, %c0_i32_1 : i32, i32, i32
  }
  func.func @transform_5(%arg0: i32) -> (i32, i32, i32) {
    %c0_i32 = arith.constant 0 : i32
    %c0_i32_0 = arith.constant 0 : i32
    %c0_i32_1 = arith.constant 0 : i32
    %c0_i32_2 = arith.constant 0 : i32
    return %c0_i32, %c0_i32_0, %c0_i32_1 : i32, i32, i32
  }
  func.func @transform_6(%arg0: i32) -> (i32, i32, i32) {
    %c0_i32 = arith.constant 0 : i32
    %c0_i32_0 = arith.constant 0 : i32
    %c0_i32_1 = arith.constant 0 : i32
    %c0_i32_2 = arith.constant 0 : i32
    return %c0_i32, %c0_i32_0, %c0_i32_1 : i32, i32, i32
  }
  func.func @transform_7(%arg0: i32) -> (i32, i32, i32) {
    %c0_i32 = arith.constant 0 : i32
    %c0_i32_0 = arith.constant 0 : i32
    %c0_i32_1 = arith.constant 0 : i32
    return %c0_i32, %arg0, %c0_i32_0 : i32, i32, i32
  }
}

</mosaic_0001>

<bundles_post_ra>
// kernel: tpu_custom_call.1
= control target key start
LH: loop header
LB: loop body
LE: loop exit
PB: predicated region body
PF: predicated region fallthrough
CT: control target
= control target key end

     0   :  { %12 = vsyncpa [#allocation3], 0  ;;  %s5841_s0 = inlined_call_operand.hbm [shape: bf16[16,384], index: 0, kind: input, shape index: {}]   ;;  %s5842_s1 = inlined_call_operand.hbm [shape: bf16[384,768], index: 1, kind: input, shape index: {}]   ;;  %s5843_s2 = inlined_call_operand.vmem [shape: f32[1,768], index: 2, kind: input, shape index: {}]   ;;  %s5844_s3 = inlined_call_operand.hbm [shape: bf16[2,384,384], index: 3, kind: input, shape index: {}]   ;;  %s5845_s4 = inlined_call_operand.vmem [shape: f32[2,1,384], index: 4, kind: input, shape index: {}]   ;;  %s5846_s5 = inlined_call_operand.hbm [shape: bf16[2,384,384], index: 5, kind: input, shape index: {}]   ;;  %s5847_s6 = inlined_call_operand.vmem [shape: f32[2,1,384], index: 6, kind: input, shape index: {}]   ;;  %s5848_s7 = inlined_call_operand.hbm [shape: bf16[2,16,384], index: 7, kind: output, shape index: {}]  }
   0x1   :  { %13 = vsyncpa [#allocation6], 0 }
   0x2   :  { %14 = vsyncpa [#allocation9], 0 }
   0x3   :  { %15 = vsyncpa [#allocation4], 0  ;;  %s5540_s24 = smov [#allocation5]   ;;  %s5422_s28 = scalar_lea.hbm %s5842_s1, 18432 }
   0x4   :  { %s33_s25 = sshll.u32 %s5540_s24, 4  ;;  %p5423_p0 = scmp.ne.s32.totalorder %s5842_s1, %s5422_s28  ;;  %s34_s25 = int_to_ptr.vmem [resolvable:$true] %s33_s25 }
   0x5   :  { %p5426_p1 = scmp.lt.u32.totalorder %s5422_s28, %s5842_s1 }
   0x7   :  { %p5428_p2 = pnand %p5426_p1, %p5423_p0 }
   0x9   :  { %5431 = shalt.err (!%p5428_p2)
}
   0xa   :  { %s5432_s10 = scalar_lea.vmem %s34_s25, 18432  ;;  %p5437_p4 = scmp.lt.s32.totalorder %s34_s25, %s34_s25 }
   0xb   :  { %p5433_p3 = scmp.ne.s32.totalorder %s34_s25, %s5432_s10  ;;  %p5438_p5 = scmp.lt.s32.totalorder %s5432_s10, %s5432_s10 }
   0xd   :  { %p5439_p6 = por %p5438_p5, %p5437_p4 }
   0xf   :  { %p5440_p7 = pnand %p5439_p6, %p5433_p3 }
  0x11   :  { %5443 = shalt.err (!%p5440_p7)
}
  0x12   :  { %s5541_s11 = smov 384   ;;  %s5542_s12 = smov 24  }
  0x13   :  { %39 = dma.hbm_to_vmem [thread:$0]  %s5842_s1, 18432, %s34_s25, [#allocation6], %s5541_s11, %s5541_s11, %s5542_s12  }
  0x14   :  { %s5543_s15 = smov [#allocation2]   ;;  %s5444_s19 = scalar_lea.hbm %s5841_s0, 384 }
  0x15   :  { %s21_s16 = sshll.u32 %s5543_s15, 4  ;;  %p5445_p8 = scmp.ne.s32.totalorder %s5841_s0, %s5444_s19  ;;  %s22_s16 = int_to_ptr.vmem [resolvable:$true] %s21_s16 }
  0x16   :  { %p5448_p9 = scmp.lt.u32.totalorder %s5444_s19, %s5841_s0 }
  0x18   :  { %p5450_p10 = pnand %p5448_p9, %p5445_p8 }
  0x1a   :  { %5453 = shalt.err (!%p5450_p10)
}
  0x1b   :  { %s5454_s24 = scalar_lea.vmem %s22_s16, 384  ;;  %p5459_p12 = scmp.lt.s32.totalorder %s22_s16, %s22_s16 }
  0x1c   :  { %p5455_p11 = scmp.ne.s32.totalorder %s22_s16, %s5454_s24  ;;  %p5460_p13 = scmp.lt.s32.totalorder %s5454_s24, %s5454_s24 }
  0x1e   :  { %p5461_p0 = por %p5460_p13, %p5459_p12 }
  0x20   :  { %p5462_p1 = pnand %p5461_p0, %p5455_p11 }
  0x22   :  { %5465 = shalt.err (!%p5462_p1)
}
  0x23   :  { %s5544_s1 = smov 192   ;;  %s5545_s25 = smov 12  }
  0x24   :  { %27 = dma.hbm_to_vmem [thread:$0]  %s5841_s0, 384, %s22_s16, [#allocation3], %s5544_s1, %s5544_s1, %s5545_s25  }
  0x25   :  { %s5546_s28 = smov [#allocation7]   ;;  %s5547_s30 = smov [#allocation8]  }
  0x26   :  { %s47_s29 = sshll.u32 %s5546_s28, 4  ;;  %s61_s8 = sshll.u32 %s5547_s30, 4  ;;  %s48_s29 = int_to_ptr.vmem [resolvable:$true] %s47_s29  ;;  %s5619_s8 = int_to_ptr.vmem [resolvable:$true] %s61_s8 }
  0x27   :  { %s5466_s11 = scalar_lea.hbm %s5844_s3, 18432 }
  0x28   :  { %p5467_p2 = scmp.ne.s32.totalorder %s5844_s3, %s5466_s11  ;;  %p5470_p3 = scmp.lt.u32.totalorder %s5466_s11, %s5844_s3 }
  0x2a   :  { %p5472_p4 = pnand %p5470_p3, %p5467_p2 }
  0x2c   :  { %5475 = shalt.err (!%p5472_p4)
}
  0x2d   :  { %s5476_s0 = scalar_lea.vmem %s48_s29, 18432  ;;  %p5481_p6 = scmp.lt.s32.totalorder %s48_s29, %s48_s29 }
  0x2e   :  { %p5477_p5 = scmp.ne.s32.totalorder %s48_s29, %s5476_s0  ;;  %p5482_p7 = scmp.lt.s32.totalorder %s5476_s0, %s5476_s0 }
  0x30   :  { %p5483_p8 = por %p5482_p7, %p5481_p6 }
  0x32   :  { %p5484_p9 = pnand %p5483_p8, %p5477_p5 }
  0x34   :  { %5487 = shalt.err (!%p5484_p9)
}
  0x35   :  { %53 = dma.hbm_to_vmem [thread:$0]  %s5844_s3, 18432, %s48_s29, [#allocation6], %s5544_s1, %s5544_s1, %s5545_s25  }
  0x36   :  { %s5488_s20 = scalar_lea.hbm %s5846_s5, 18432 }
  0x37   :  { %p5489_p10 = scmp.ne.s32.totalorder %s5846_s5, %s5488_s20  ;;  %p5492_p11 = scmp.lt.u32.totalorder %s5488_s20, %s5846_s5 }
  0x39   :  { %p5494_p12 = pnand %p5492_p11, %p5489_p10 }
  0x3b   :  { %5497 = shalt.err (!%p5494_p12)
}
  0x3c   :  { %s5498_s26 = scalar_lea.vmem %s5619_s8, 18432  ;;  %p5503_p0 = scmp.lt.s32.totalorder %s5619_s8, %s5619_s8 }
  0x3d   :  { %p5499_p13 = scmp.ne.s32.totalorder %s5619_s8, %s5498_s26  ;;  %p5504_p1 = scmp.lt.s32.totalorder %s5498_s26, %s5498_s26 }
  0x3f   :  { %p5505_p2 = por %p5504_p1, %p5503_p0 }
  0x41   :  { %p5506_p3 = pnand %p5505_p2, %p5499_p13 }
  0x43   :  { %5509 = shalt.err (!%p5506_p3)
}
  0x44   :  { %67 = dma.hbm_to_vmem [thread:$0]  %s5846_s5, 18432, %s5619_s8, [#allocation9], %s5544_s1, %s5544_s1, %s5545_s25  }
  0x45   :  { %5532 = dma.done.wait [#allocation3], 384  }
  0x46   :  { %5533 = vsyncadd [#allocation3], 4294966912 }
  0x47   :  { %5534 = dma.done.wait [#allocation6], 36864  }
  0x48   :  { %5535 = vsyncadd [#allocation6], 4294930432 }
  0x49   :  { %5536 = dma.done.wait [#allocation9], 18432  }
  0x4a   :  { %5537 = vsyncadd [#allocation9], 4294948864  ;;  %v4810_v0 = vld [vmem:[#allocation5 + $0x4] ss:$24 sps:$4 sm:$0xff]   ;;  %v4814_v2 = vld [vmem:[#allocation5] ss:$24 sps:$4 sm:$0xff]  }
  0x4b   :  { %v4812_v1 = vld [vmem:[#allocation5 + $0xc] ss:$24 sps:$4 sm:$0xff]   ;;  %999 = vmatprep.subr.bf16.mxu0 %v4810_v0  ;;  %v4815_v3 = vld [vmem:[#allocation5 + $0x8] ss:$24 sps:$4 sm:$0xff]   ;;  %v4818_v5 = vld [vmem:[#allocation5 + $0x3c] ss:$24 sps:$4 sm:$0xff]  }
  0x4c   :  { %1085 = vmatprep.subr.bf16.mxu1 %v4812_v1  ;;  %v4816_v4 = vld [vmem:[#allocation5 + $0x34] ss:$24 sps:$4 sm:$0xff]   ;;  %1000 = vmatpush1.bf16.msra.mxu0 %v4814_v2  ;;  %v4820_v6 = vld [vmem:[#allocation5 + $0x30] ss:$24 sps:$4 sm:$0xff]   ;;  %v4822_v8 = vld [vmem:[#allocation5 + $0x64] ss:$24 sps:$4 sm:$0xff]  }
  0x4d   :  { %1086 = vmatpush1.bf16.msra.mxu1 %v4815_v3  ;;  %1001 = vmatprep.subr.bf16.mxu0 %v4816_v4  ;;  %v4821_v7 = vld [vmem:[#allocation5 + $0x38] ss:$24 sps:$4 sm:$0xff]   ;;  %v4824_v9 = vld [vmem:[#allocation5 + $0x6c] ss:$24 sps:$4 sm:$0xff]   ;;  %v4827_v11 = vld [vmem:[#allocation5 + $0x68] ss:$24 sps:$4 sm:$0xff]  }
  0x4e   :  { %1087 = vmatprep.subr.bf16.mxu1 %v4818_v5  ;;  %v4826_v10 = vld [vmem:[#allocation5 + $0x60] ss:$24 sps:$4 sm:$0xff]   ;;  %v4828_v12 = vld [vmem:[#allocation5 + $0x94] ss:$24 sps:$4 sm:$0xff]   ;;  %v4832_v14 = vld [vmem:[#allocation5 + $0x90] ss:$24 sps:$4 sm:$0xff]  }
  0x4f   :  { %v4830_v13 = vld [vmem:[#allocation5 + $0x9c] ss:$24 sps:$4 sm:$0xff]   ;;  %v4833_v15 = vld [vmem:[#allocation5 + $0x98] ss:$24 sps:$4 sm:$0xff]   ;;  %v4836_v17 = vld [vmem:[#allocation5 + $0xcc] ss:$24 sps:$4 sm:$0xff]  }
  0x50   :  { %1002 = vmatpush1.bf16.msra.mxu0 %v4820_v6  ;;  %v4834_v16 = vld [vmem:[#allocation5 + $0xc4] ss:$24 sps:$4 sm:$0xff]   ;;  %v4838_v18 = vld [vmem:[#allocation5 + $0xc0] ss:$24 sps:$4 sm:$0xff]   ;;  %v4840_v20 = vld [vmem:[#allocation5 + $0xf4] ss:$24 sps:$4 sm:$0xff]  }
  0x51   :  { %1088 = vmatpush1.bf16.msra.mxu1 %v4821_v7  ;;  %1003 = vmatprep.subr.bf16.mxu0 %v4822_v8  ;;  %v4839_v19 = vld [vmem:[#allocation5 + $0xc8] ss:$24 sps:$4 sm:$0xff]   ;;  %v4842_v21 = vld [vmem:[#allocation5 + $0xfc] ss:$24 sps:$4 sm:$0xff]   ;;  %v4845_v23 = vld [vmem:[#allocation5 + $0xf8] ss:$24 sps:$4 sm:$0xff]  }
  0x52   :  { %1089 = vmatprep.subr.bf16.mxu1 %v4824_v9  ;;  %v4844_v22 = vld [vmem:[#allocation5 + $0xf0] ss:$24 sps:$4 sm:$0xff]   ;;  %v4846_v24 = vld [vmem:[#allocation5 + $0x124] ss:$24 sps:$4 sm:$0xff]   ;;  %v4850_v26 = vld [vmem:[#allocation5 + $0x120] ss:$24 sps:$4 sm:$0xff]  }
  0x53   :  { %v4848_v25 = vld [vmem:[#allocation5 + $0x12c] ss:$24 sps:$4 sm:$0xff]   ;;  %v4851_v27 = vld [vmem:[#allocation5 + $0x128] ss:$24 sps:$4 sm:$0xff]   ;;  %v4854_v29 = vld [vmem:[#allocation5 + $0x15c] ss:$24 sps:$4 sm:$0xff]  }
  0x54   :  { %1004 = vmatpush1.bf16.msra.mxu0 %v4826_v10  ;;  %v4852_v28 = vld [vmem:[#allocation5 + $0x154] ss:$24 sps:$4 sm:$0xff]   ;;  %v4856_v30 = vld [vmem:[#allocation5 + $0x150] ss:$24 sps:$4 sm:$0xff]   ;;  %v4858_v32 = vld [vmem:[#allocation5 + $0x184] ss:$24 sps:$4 sm:$0xff]  }
  0x55   :  { %1090 = vmatpush1.bf16.msra.mxu1 %v4827_v11  ;;  %1005 = vmatprep.subr.bf16.mxu0 %v4828_v12  ;;  %v4857_v31 = vld [vmem:[#allocation5 + $0x158] ss:$24 sps:$4 sm:$0xff]   ;;  %v4860_v33 = vld [vmem:[#allocation5 + $0x18c] ss:$24 sps:$4 sm:$0xff]   ;;  %v4863_v35 = vld [vmem:[#allocation5 + $0x188] ss:$24 sps:$4 sm:$0xff]  }
  0x56   :  { %1091 = vmatprep.subr.bf16.mxu1 %v4830_v13  ;;  %v4862_v34 = vld [vmem:[#allocation5 + $0x180] ss:$24 sps:$4 sm:$0xff]   ;;  %v4864_v36 = vld [vmem:[#allocation5 + $0x1b4] ss:$24 sps:$4 sm:$0xff]   ;;  %v4868_v38 = vld [vmem:[#allocation5 + $0x1b0] ss:$24 sps:$4 sm:$0xff]  }
  0x57   :  { %v4866_v37 = vld [vmem:[#allocation5 + $0x1bc] ss:$24 sps:$4 sm:$0xff]   ;;  %v4869_v39 = vld [vmem:[#allocation5 + $0x1b8] ss:$24 sps:$4 sm:$0xff]   ;;  %v4872_v41 = vld [vmem:[#allocation5 + $0x1ec] ss:$24 sps:$4 sm:$0xff]  }
  0x58   :  { %1006 = vmatpush1.bf16.msra.mxu0 %v4832_v14  ;;  %v4870_v40 = vld [vmem:[#allocation5 + $0x1e4] ss:$24 sps:$4 sm:$0xff]   ;;  %v4874_v42 = vld [vmem:[#allocation5 + $0x1e0] ss:$24 sps:$4 sm:$0xff]   ;;  %v4876_v44 = vld [vmem:[#allocation5 + $0x214] ss:$24 sps:$4 sm:$0xff]  }
  0x59   :  { %1092 = vmatpush1.bf16.msra.mxu1 %v4833_v15  ;;  %1007 = vmatprep.subr.bf16.mxu0 %v4834_v16  ;;  %v4875_v43 = vld [vmem:[#allocation5 + $0x1e8] ss:$24 sps:$4 sm:$0xff]   ;;  %v4878_v45 = vld [vmem:[#allocation5 + $0x21c] ss:$24 sps:$4 sm:$0xff]   ;;  %v5656_v47 = vld [vmem:[#allocation2 + $0x4] ss:$12 sps:$4 sm:$0xff]  }
  0x5a   :  { %1093 = vmatprep.subr.bf16.mxu1 %v4836_v17  ;;  %v4880_v46 = vld [vmem:[#allocation5 + $0x210] ss:$24 sps:$4 sm:$0xff]   ;;  %v4882_v49 = vld [vmem:[#allocation5 + $0x244] ss:$24 sps:$4 sm:$0xff]   ;;  %1031 = vmatprep.mubr.bf16.mxu0 %v5656_v47  ;;  %v4886_v51 = vld [vmem:[#allocation5 + $0x240] ss:$24 sps:$4 sm:$0xff]  }
  0x5b   :  { %v4881_v48 = vld [vmem:[#allocation5 + $0x218] ss:$24 sps:$4 sm:$0xff]   ;;  %v4884_v50 = vld [vmem:[#allocation5 + $0x24c] ss:$24 sps:$4 sm:$0xff]   ;;  %1117 = vmatprep.mubr.bf16.mxu1 %v5656_v47  ;;  %v4887_v52 = vld [vmem:[#allocation5 + $0x248] ss:$24 sps:$4 sm:$0xff]  }
  0x5c   :  { %1008 = vmatpush1.bf16.msra.mxu0 %v4838_v18  ;;  %v4888_v53 = vld [vmem:[#allocation5 + $0x274] ss:$24 sps:$4 sm:$0xff]   ;;  %v4892_v55 = vld [vmem:[#allocation5 + $0x270] ss:$24 sps:$4 sm:$0xff]   ;;  %v4894_v57 = vld [vmem:[#allocation5 + $0x2a4] ss:$24 sps:$4 sm:$0xff]  }
  0x5d   :  { %1094 = vmatpush1.bf16.msra.mxu1 %v4839_v19  ;;  %1009 = vmatprep.subr.bf16.mxu0 %v4840_v20  ;;  %v4890_v54 = vld [vmem:[#allocation5 + $0x27c] ss:$24 sps:$4 sm:$0xff]   ;;  %v4893_v56 = vld [vmem:[#allocation5 + $0x278] ss:$24 sps:$4 sm:$0xff]   ;;  %v4896_v58 = vld [vmem:[#allocation5 + $0x2ac] ss:$24 sps:$4 sm:$0xff]  }
  0x5e   :  { %1095 = vmatprep.subr.bf16.mxu1 %v4842_v21  ;;  %v4898_v59 = vld [vmem:[#allocation5 + $0x2a0] ss:$24 sps:$4 sm:$0xff]   ;;  %v4900_v61 = vld [vmem:[#allocation5 + $0x2d4] ss:$24 sps:$4 sm:$0xff]   ;;  %v4904_v63 = vld [vmem:[#allocation5 + $0x2d0] ss:$24 sps:$4 sm:$0xff]  }
  0x5f   :  { %v4899_v60 = vld [vmem:[#allocation5 + $0x2a8] ss:$24 sps:$4 sm:$0xff]   ;;  %v4902_v62 = vld [vmem:[#allocation5 + $0x2dc] ss:$24 sps:$4 sm:$0xff]   ;;  %v4905_v0 = vld [vmem:[#allocation5 + $0x2d8] ss:$24 sps:$4 sm:$0xff]  }
  0x60   :  { %1010 = vmatpush1.bf16.msra.mxu0 %v4844_v22  ;;  %v4910_v1 = vld [vmem:[#allocation5 + $0x304] ss:$24 sps:$4 sm:$0xff]   ;;  %v4908_v3 = vld [vmem:[#allocation5 + $0x300] ss:$24 sps:$4 sm:$0xff]   ;;  %v5660_v5 = vld [vmem:[#allocation2] ss:$12 sps:$4 sm:$0xff]  }
  0x61   :  { %1096 = vmatpush1.bf16.msra.mxu1 %v4845_v23  ;;  %1011 = vmatprep.subr.bf16.mxu0 %v4846_v24  ;;  %v4913_v2 = vld [vmem:[#allocation5 + $0x30c] ss:$24 sps:$4 sm:$0xff]   ;;  %v4911_v4 = vld [vmem:[#allocation5 + $0x308] ss:$24 sps:$4 sm:$0xff]   ;;  %v4920_v7 = vld [vmem:[#allocation5 + $0x33c] ss:$24 sps:$4 sm:$0xff]  }
  0x62   :  { %1097 = vmatprep.subr.bf16.mxu1 %v4848_v25  ;;  %v4917_v6 = vld [vmem:[#allocation5 + $0x334] ss:$24 sps:$4 sm:$0xff]   ;;  %v4915_v8 = vld [vmem:[#allocation5 + $0x330] ss:$24 sps:$4 sm:$0xff]   ;;  %v4923_v10 = vld [vmem:[#allocation5 + $0x364] ss:$24 sps:$4 sm:$0xff]  }
  0x63   :  { %v4918_v9 = vld [vmem:[#allocation5 + $0x338] ss:$24 sps:$4 sm:$0xff]   ;;  %v4926_v11 = vld [vmem:[#allocation5 + $0x36c] ss:$24 sps:$4 sm:$0xff]   ;;  %v5548_v12 = vmov 0   ;;  %vm5550_vm0 = vmmov 0  }
  0x64   :  { %1012 = vmatpush1.bf16.msra.mxu0 %v4850_v26  ;;  %v4921_v13 = vld [vmem:[#allocation5 + $0x360] ss:$24 sps:$4 sm:$0xff]   ;;  %v4929_v15 = vld [vmem:[#allocation5 + $0x394] ss:$24 sps:$4 sm:$0xff]   ;;  %v4927_v17 = vld [vmem:[#allocation5 + $0x390] ss:$24 sps:$4 sm:$0xff]  }
  0x65   :  { %1098 = vmatpush1.bf16.msra.mxu1 %v4851_v27  ;;  %1013 = vmatprep.subr.bf16.mxu0 %v4852_v28  ;;  %v4924_v14 = vld [vmem:[#allocation5 + $0x368] ss:$24 sps:$4 sm:$0xff]   ;;  %v4932_v16 = vld [vmem:[#allocation5 + $0x39c] ss:$24 sps:$4 sm:$0xff]   ;;  %v4930_v18 = vld [vmem:[#allocation5 + $0x398] ss:$24 sps:$4 sm:$0xff]  }
  0x66   :  { %1099 = vmatprep.subr.bf16.mxu1 %v4854_v29  ;;  %v4935_v19 = vld [vmem:[#allocation5 + $0x3c4] ss:$24 sps:$4 sm:$0xff]   ;;  %v4933_v21 = vld [vmem:[#allocation5 + $0x3c0] ss:$24 sps:$4 sm:$0xff]   ;;  %v4941_v23 = vld [vmem:[#allocation5 + $0x3f4] ss:$24 sps:$4 sm:$0xff]  }
  0x67   :  { %v4938_v20 = vld [vmem:[#allocation5 + $0x3cc] ss:$24 sps:$4 sm:$0xff]   ;;  %v4936_v22 = vld [vmem:[#allocation5 + $0x3c8] ss:$24 sps:$4 sm:$0xff]   ;;  %v4944_v24 = vld [vmem:[#allocation5 + $0x3fc] ss:$24 sps:$4 sm:$0xff]  }
  0x68   :  { %1014 = vmatpush1.bf16.msra.mxu0 %v4856_v30  ;;  %v4939_v25 = vld [vmem:[#allocation5 + $0x3f0] ss:$24 sps:$4 sm:$0xff]   ;;  %v4947_v27 = vld [vmem:[#allocation5 + $0x424] ss:$24 sps:$4 sm:$0xff]   ;;  %v4945_v29 = vld [vmem:[#allocation5 + $0x420] ss:$24 sps:$4 sm:$0xff]  }
  0x69   :  { %1100 = vmatpush1.bf16.msra.mxu1 %v4857_v31  ;;  %1015 = vmatprep.subr.bf16.mxu0 %v4858_v32  ;;  %v4942_v26 = vld [vmem:[#allocation5 + $0x3f8] ss:$24 sps:$4 sm:$0xff]   ;;  %v4950_v28 = vld [vmem:[#allocation5 + $0x42c] ss:$24 sps:$4 sm:$0xff]   ;;  %v4948_v30 = vld [vmem:[#allocation5 + $0x428] ss:$24 sps:$4 sm:$0xff]  }
  0x6a   :  { %1101 = vmatprep.subr.bf16.mxu1 %v4860_v33  ;;  %v4953_v31 = vld [vmem:[#allocation5 + $0x454] ss:$24 sps:$4 sm:$0xff]   ;;  %v4951_v33 = vld [vmem:[#allocation5 + $0x450] ss:$24 sps:$4 sm:$0xff]  }
  0x6b   :  { %v4956_v32 = vld [vmem:[#allocation5 + $0x45c] ss:$24 sps:$4 sm:$0xff]  }
  0x6c   :  { %1016 = vmatpush1.bf16.msra.mxu0 %v4862_v34  ;;  %v4954_v34 = vld [vmem:[#allocation5 + $0x458] ss:$24 sps:$4 sm:$0xff]  }
  0x6d   :  { %1102 = vmatpush1.bf16.msra.mxu1 %v4863_v35  ;;  %1017 = vmatprep.subr.bf16.mxu0 %v4864_v36  ;;  %v4960_v35 = vld [vmem:[#allocation5 + $0x14] ss:$24 sps:$4 sm:$0xff]   ;;  %v5008_v36 = vld [vmem:[#allocation7 + $0x4] ss:$12 sps:$4 sm:$0xff]  }
  0x6e   :  { %1103 = vmatprep.subr.bf16.mxu1 %v4866_v37  ;;  %v5666_v37 = vld [vmem:[#allocation2 + $0x8] ss:$12 sps:$4 sm:$0xff]  }
  0x70   :  { %1018 = vmatpush1.bf16.msra.mxu0 %v4868_v38  ;;  %v4958_v38 = vld [vmem:[#allocation5 + $0x10] ss:$24 sps:$4 sm:$0xff]  }
  0x71   :  { %1104 = vmatpush1.bf16.msra.mxu1 %v4869_v39  ;;  %1019 = vmatprep.subr.bf16.mxu0 %v4870_v40  ;;  %v4963_v39 = vld [vmem:[#allocation5 + $0x44] ss:$24 sps:$4 sm:$0xff]   ;;  %v5006_v40 = vld [vmem:[#allocation7] ss:$12 sps:$4 sm:$0xff]  }
  0x72   :  { %1105 = vmatprep.subr.bf16.mxu1 %v4872_v41  ;;  %v5014_v41 = vld [vmem:[#allocation7 + $0x1c] ss:$12 sps:$4 sm:$0xff]  }
  0x74   :  { %1020 = vmatpush1.bf16.msra.mxu0 %v4874_v42  ;;  %v4961_v42 = vld [vmem:[#allocation5 + $0x40] ss:$24 sps:$4 sm:$0xff]  }
  0x75   :  { %1106 = vmatpush1.bf16.msra.mxu1 %v4875_v43  ;;  %1021 = vmatprep.subr.bf16.mxu0 %v4876_v44  ;;  %v4966_v43 = vld [vmem:[#allocation5 + $0x74] ss:$24 sps:$4 sm:$0xff]   ;;  %v5012_v44 = vld [vmem:[#allocation7 + $0x18] ss:$12 sps:$4 sm:$0xff]  }
  0x76   :  { %1107 = vmatprep.subr.bf16.mxu1 %v4878_v45  ;;  %v5020_v45 = vld [vmem:[#allocation7 + $0x34] ss:$12 sps:$4 sm:$0xff]  }
  0x78   :  { %1022 = vmatpush1.bf16.msra.mxu0 %v4880_v46  ;;  %v4964_v46 = vld [vmem:[#allocation5 + $0x70] ss:$24 sps:$4 sm:$0xff]  }
  0x79   :  { %1108 = vmatpush1.bf16.msra.mxu1 %v4881_v48  ;;  %1023 = vmatprep.subr.bf16.mxu0 %v4882_v49  ;;  %v4969_v48 = vld [vmem:[#allocation5 + $0xa4] ss:$24 sps:$4 sm:$0xff]  }
  0x7a   :  { %1109 = vmatprep.subr.bf16.mxu1 %v4884_v50  ;;  %v5018_v49 = vld [vmem:[#allocation7 + $0x30] ss:$12 sps:$4 sm:$0xff]   ;;  %v5026_v50 = vld [vmem:[#allocation7 + $0x4c] ss:$12 sps:$4 sm:$0xff]  }
  0x7c   :  { %1024 = vmatpush1.bf16.msra.mxu0 %v4886_v51  ;;  %v4967_v51 = vld [vmem:[#allocation5 + $0xa0] ss:$24 sps:$4 sm:$0xff]  }
  0x7d   :  { %1110 = vmatpush1.bf16.msra.mxu1 %v4887_v52  ;;  %1025 = vmatprep.subr.bf16.mxu0 %v4888_v53  ;;  %v4972_v52 = vld [vmem:[#allocation5 + $0xd4] ss:$24 sps:$4 sm:$0xff]  }
  0x7e   :  { %1111 = vmatprep.subr.bf16.mxu1 %v4890_v54  ;;  %v5024_v53 = vld [vmem:[#allocation7 + $0x48] ss:$12 sps:$4 sm:$0xff]  }
  0x7f   :  { %v4970_v54 = vld [vmem:[#allocation5 + $0xd0] ss:$24 sps:$4 sm:$0xff]  }
  0x80   :  { %1026 = vmatpush1.bf16.msra.mxu0 %v4892_v55  ;;  %v4975_v55 = vld [vmem:[#allocation5 + $0x104] ss:$24 sps:$4 sm:$0xff]  }
  0x81   :  { %1112 = vmatpush1.bf16.msra.mxu1 %v4893_v56  ;;  %1027 = vmatprep.subr.bf16.mxu0 %v4894_v57  ;;  %v5030_v56 = vld [vmem:[#allocation7 + $0x60] ss:$12 sps:$4 sm:$0xff]   ;;  %v5038_v57 = vld [vmem:[#allocation7 + $0x7c] ss:$12 sps:$4 sm:$0xff]  }
  0x82   :  { %1113 = vmatprep.subr.bf16.mxu1 %v4896_v58  ;;  %v4973_v58 = vld [vmem:[#allocation5 + $0x100] ss:$24 sps:$4 sm:$0xff]  }
  0x84   :  { %1028 = vmatpush1.bf16.msra.mxu0 %v4898_v59  ;;  %v4978_v59 = vld [vmem:[#allocation5 + $0x134] ss:$24 sps:$4 sm:$0xff]  }
  0x85   :  { %1114 = vmatpush1.bf16.msra.mxu1 %v4899_v60  ;;  %1029 = vmatprep.subr.bf16.mxu0 %v4900_v61  ;;  %v5036_v60 = vld [vmem:[#allocation7 + $0x78] ss:$12 sps:$4 sm:$0xff]   ;;  %v5044_v61 = vld [vmem:[#allocation7 + $0x94] ss:$12 sps:$4 sm:$0xff]  }
  0x86   :  { %1115 = vmatprep.subr.bf16.mxu1 %v4902_v62  ;;  %v4976_v62 = vld [vmem:[#allocation5 + $0x130] ss:$24 sps:$4 sm:$0xff]  }
  0x88   :  { %1030 = vmatpush1.bf16.msra.mxu0 %v4904_v63  ;;  %v4981_v63 = vld [vmem:[#allocation5 + $0x164] ss:$24 sps:$4 sm:$0xff]  }
  0x89   :  { %1116 = vmatpush1.bf16.msra.mxu1 %v4905_v0  ;;  %1042 = vmatprep.subr.bf16.mxu0 %v4910_v1  ;;  %v5042_v0 = vld [vmem:[#allocation7 + $0x90] ss:$12 sps:$4 sm:$0xff]   ;;  %v5050_v1 = vld [vmem:[#allocation7 + $0xac] ss:$12 sps:$4 sm:$0xff]  }
  0x8a   :  { %1128 = vmatprep.subr.bf16.mxu1 %v4913_v2  ;;  %v4979_v2 = vld [vmem:[#allocation5 + $0x160] ss:$24 sps:$4 sm:$0xff]  }
  0x8b   :  { %1032 = vmatmul.mubr.bf16.vlgmr.msra.gmra.mrb[0].mxu0 %v5660_v5 }
  0x8c   :  { %1118 = vmatmul.mubr.bf16.vlgmr.msra.gmra.mrb[0].mxu1 %v5660_v5  ;;  %1043 = vmatpush1.bf16.msra.mxu0 %v4908_v3  ;;  %v4984_v3 = vld [vmem:[#allocation5 + $0x194] ss:$24 sps:$4 sm:$0xff]  }
  0x8d   :  { %1129 = vmatpush1.bf16.msra.mxu1 %v4911_v4  ;;  %1044 = vmatprep.subr.bf16.mxu0 %v4917_v6  ;;  %v5048_v4 = vld [vmem:[#allocation7 + $0xa8] ss:$12 sps:$4 sm:$0xff]  }
  0x8e   :  { %1130 = vmatprep.subr.bf16.mxu1 %v4920_v7  ;;  %1074 = vmatprep.mubr.bf16.mxu0 %v5548_v12  ;;  %v4982_v6 = vld [vmem:[#allocation5 + $0x190] ss:$24 sps:$4 sm:$0xff]  }
  0x8f   :  { %1160 = vmatprep.mubr.bf16.mxu1 %v5548_v12  ;;  %v5056_v7 = vld [vmem:[#allocation7 + $0xc4] ss:$12 sps:$4 sm:$0xff]  }
  0x90   :  { %1045 = vmatpush1.bf16.msra.mxu0 %v4915_v8  ;;  %v4987_v8 = vld [vmem:[#allocation5 + $0x1c4] ss:$24 sps:$4 sm:$0xff]  }
  0x91   :  { %1131 = vmatpush1.bf16.msra.mxu1 %v4918_v9  ;;  %1046 = vmatprep.subr.bf16.mxu0 %v4923_v10  ;;  %v5054_v9 = vld [vmem:[#allocation7 + $0xc0] ss:$12 sps:$4 sm:$0xff]   ;;  %v5061_v10 = vld [vmem:[#allocation7 + $0xdc] ss:$12 sps:$4 sm:$0xff]  }
  0x92   :  { %1132 = vmatprep.subr.bf16.mxu1 %v4926_v11  ;;  %v4985_v11 = vld [vmem:[#allocation5 + $0x1c0] ss:$24 sps:$4 sm:$0xff]  }
  0x94   :  { %1047 = vmatpush1.bf16.msra.mxu0 %v4921_v13  ;;  %v4990_v13 = vld [vmem:[#allocation5 + $0x1f4] ss:$24 sps:$4 sm:$0xff]  }
  0x95   :  { %1133 = vmatpush1.bf16.msra.mxu1 %v4924_v14  ;;  %1048 = vmatprep.subr.bf16.mxu0 %v4929_v15  ;;  %v5059_v14 = vld [vmem:[#allocation7 + $0xd8] ss:$12 sps:$4 sm:$0xff]   ;;  %v5066_v15 = vld [vmem:[#allocation7 + $0xf4] ss:$12 sps:$4 sm:$0xff]  }
  0x96   :  { %1134 = vmatprep.subr.bf16.mxu1 %v4932_v16  ;;  %v4988_v16 = vld [vmem:[#allocation5 + $0x1f0] ss:$24 sps:$4 sm:$0xff]  }
  0x98   :  { %1049 = vmatpush1.bf16.msra.mxu0 %v4927_v17  ;;  %v4993_v17 = vld [vmem:[#allocation5 + $0x224] ss:$24 sps:$4 sm:$0xff]  }
  0x99   :  { %1135 = vmatpush1.bf16.msra.mxu1 %v4930_v18  ;;  %1050 = vmatprep.subr.bf16.mxu0 %v4935_v19  ;;  %v5064_v18 = vld [vmem:[#allocation7 + $0xf0] ss:$12 sps:$4 sm:$0xff]   ;;  %v5071_v19 = vld [vmem:[#allocation7 + $0x10c] ss:$12 sps:$4 sm:$0xff]  }
  0x9a   :  { %1136 = vmatprep.subr.bf16.mxu1 %v4938_v20  ;;  %v4991_v20 = vld [vmem:[#allocation5 + $0x220] ss:$24 sps:$4 sm:$0xff]  }
  0x9c   :  { %1051 = vmatpush1.bf16.msra.mxu0 %v4933_v21  ;;  %v4996_v21 = vld [vmem:[#allocation5 + $0x254] ss:$24 sps:$4 sm:$0xff]  }
  0x9d   :  { %1137 = vmatpush1.bf16.msra.mxu1 %v4936_v22  ;;  %1052 = vmatprep.subr.bf16.mxu0 %v4941_v23  ;;  %v5069_v22 = vld [vmem:[#allocation7 + $0x108] ss:$12 sps:$4 sm:$0xff]   ;;  %v5076_v23 = vld [vmem:[#allocation7 + $0x124] ss:$12 sps:$4 sm:$0xff]  }
  0x9e   :  { %1138 = vmatprep.subr.bf16.mxu1 %v4944_v24  ;;  %v4994_v24 = vld [vmem:[#allocation5 + $0x250] ss:$24 sps:$4 sm:$0xff]  }
  0xa0   :  { %1053 = vmatpush1.bf16.msra.mxu0 %v4939_v25  ;;  %v4999_v25 = vld [vmem:[#allocation5 + $0x284] ss:$24 sps:$4 sm:$0xff]  }
  0xa1   :  { %1139 = vmatpush1.bf16.msra.mxu1 %v4942_v26  ;;  %1054 = vmatprep.subr.bf16.mxu0 %v4947_v27  ;;  %v5074_v26 = vld [vmem:[#allocation7 + $0x120] ss:$12 sps:$4 sm:$0xff]   ;;  %v5081_v27 = vld [vmem:[#allocation7 + $0x13c] ss:$12 sps:$4 sm:$0xff]  }
  0xa2   :  { %1140 = vmatprep.subr.bf16.mxu1 %v4950_v28  ;;  %v4997_v28 = vld [vmem:[#allocation5 + $0x280] ss:$24 sps:$4 sm:$0xff]  }
  0xa4   :  { %1055 = vmatpush1.bf16.msra.mxu0 %v4945_v29  ;;  %v5002_v29 = vld [vmem:[#allocation5 + $0x2b4] ss:$24 sps:$4 sm:$0xff]  }
  0xa5   :  { %1141 = vmatpush1.bf16.msra.mxu1 %v4948_v30  ;;  %1056 = vmatprep.subr.bf16.mxu0 %v4953_v31  ;;  %v5079_v30 = vld [vmem:[#allocation7 + $0x138] ss:$12 sps:$4 sm:$0xff]   ;;  %v5000_v31 = vld [vmem:[#allocation5 + $0x2b0] ss:$24 sps:$4 sm:$0xff]  }
  0xa6   :  { %1142 = vmatprep.subr.bf16.mxu1 %v4956_v32  ;;  %v5005_v32 = vld [vmem:[#allocation5 + $0x2e4] ss:$24 sps:$4 sm:$0xff]  }
  0xa8   :  { %1057 = vmatpush1.bf16.msra.mxu0 %v4951_v33  ;;  %v5003_v33 = vld [vmem:[#allocation5 + $0x2e0] ss:$24 sps:$4 sm:$0xff]  }
  0xa9   :  { %1143 = vmatpush1.bf16.msra.mxu1 %v4954_v34  ;;  %1171 = vmatprep.subr.bf16.mxu0 %v4960_v35  ;;  %v5011_v34 = vld [vmem:[#allocation5 + $0x314] ss:$24 sps:$4 sm:$0xff]   ;;  %v5009_v35 = vld [vmem:[#allocation5 + $0x310] ss:$24 sps:$4 sm:$0xff]  }
  0xaa   :  { %1769 = vmatprep.subr.bf16.mxu1 %v5008_v36  ;;  %v5017_v36 = vld [vmem:[#allocation5 + $0x344] ss:$24 sps:$4 sm:$0xff]  }
  0xab   :  { %1075 = vmatmul.mubr.bf16.vlgmr.msra.gmra.mrb[0].mxu0 %v5666_v37 }
  0xac   :  { %1161 = vmatmul.mubr.bf16.vlgmr.msra.gmra.mrb[0].mxu1 %v5666_v37  ;;  %1172 = vmatpush1.bf16.msra.mxu0 %v4958_v38  ;;  %v5015_v38 = vld [vmem:[#allocation5 + $0x340] ss:$24 sps:$4 sm:$0xff]  }
  0xad   :  { %1203 = vmatprep.mubr.bf16.mxu0 %v5656_v47  ;;  %1173 = vmatprep.subr.bf16.mxu0 %v4963_v39  ;;  %v5032_v47 = vld [vmem:[#allocation7 + $0x64] ss:$12 sps:$4 sm:$0xff]   ;;  %v5023_v39 = vld [vmem:[#allocation5 + $0x374] ss:$24 sps:$4 sm:$0xff]  }
  0xae   :  { %1770 = vmatpush1.bf16.msra.mxu1 %v5006_v40  ;;  %v5021_v40 = vld [vmem:[#allocation5 + $0x370] ss:$24 sps:$4 sm:$0xff]  }
  0xaf   :  { %1771 = vmatprep.subr.bf16.mxu1 %v5014_v41  ;;  %v5029_v41 = vld [vmem:[#allocation5 + $0x3a4] ss:$24 sps:$4 sm:$0xff]  }
  0xb0   :  { %1174 = vmatpush1.bf16.msra.mxu0 %v4961_v42  ;;  %v5027_v42 = vld [vmem:[#allocation5 + $0x3a0] ss:$24 sps:$4 sm:$0xff]  }
  0xb1   :  { %1175 = vmatprep.subr.bf16.mxu0 %v4966_v43  ;;  %v5035_v43 = vld [vmem:[#allocation5 + $0x3d4] ss:$24 sps:$4 sm:$0xff]  }
  0xb2   :  { %1772 = vmatpush1.bf16.msra.mxu1 %v5012_v44  ;;  %v5033_v44 = vld [vmem:[#allocation5 + $0x3d0] ss:$24 sps:$4 sm:$0xff]  }
  0xb3   :  { %1773 = vmatprep.subr.bf16.mxu1 %v5020_v45  ;;  %v5041_v45 = vld [vmem:[#allocation5 + $0x404] ss:$24 sps:$4 sm:$0xff]  }
  0xb4   :  { %1176 = vmatpush1.bf16.msra.mxu0 %v4964_v46  ;;  %v5039_v46 = vld [vmem:[#allocation5 + $0x400] ss:$24 sps:$4 sm:$0xff]  }
  0xb5   :  { %1177 = vmatprep.subr.bf16.mxu0 %v4969_v48  ;;  %v5086_v48 = vld [vmem:[#allocation7 + $0x154] ss:$12 sps:$4 sm:$0xff]  }
  0xb6   :  { %1774 = vmatpush1.bf16.msra.mxu1 %v5018_v49  ;;  %v5045_v49 = vld [vmem:[#allocation5 + $0x430] ss:$24 sps:$4 sm:$0xff]  }
  0xb7   :  { %1775 = vmatprep.subr.bf16.mxu1 %v5026_v50  ;;  %v5084_v50 = vld [vmem:[#allocation7 + $0x150] ss:$12 sps:$4 sm:$0xff]  }
  0xb8   :  { %1178 = vmatpush1.bf16.msra.mxu0 %v4967_v51  ;;  %v5053_v51 = vld [vmem:[#allocation5 + $0x464] ss:$24 sps:$4 sm:$0xff]  }
  0xb9   :  { %1179 = vmatprep.subr.bf16.mxu0 %v4972_v52  ;;  %v5091_v52 = vld [vmem:[#allocation7 + $0x16c] ss:$12 sps:$4 sm:$0xff]  }
  0xba   :  { %1776 = vmatpush1.bf16.msra.mxu1 %v5024_v53  ;;  %v5051_v53 = vld [vmem:[#allocation5 + $0x460] ss:$24 sps:$4 sm:$0xff]  }
  0xbb   :  { %1777 = vmatprep.subr.bf16.mxu1 %v5032_v47  ;;  %v5089_v47 = vld [vmem:[#allocation7 + $0x168] ss:$12 sps:$4 sm:$0xff]  }
  0xbc   :  { %1180 = vmatpush1.bf16.msra.mxu0 %v4970_v54  ;;  %v5057_v54 = vld [vmem:[#allocation7 + $0xc8] ss:$12 sps:$4 sm:$0xff]  }
  0xbd   :  { %1181 = vmatprep.subr.bf16.mxu0 %v4975_v55  ;;  %v5058_v55 = vld [vmem:[#allocation7 + $0x8] ss:$12 sps:$4 sm:$0xff]  }
  0xbe   :  { %1778 = vmatpush1.bf16.msra.mxu1 %v5030_v56  ;;  %v5096_v56 = vld [vmem:[#allocation7 + $0x184] ss:$12 sps:$4 sm:$0xff]  }
  0xbf   :  { %1779 = vmatprep.subr.bf16.mxu1 %v5038_v57  ;;  %v5062_v57 = vld [vmem:[#allocation7 + $0xe0] ss:$12 sps:$4 sm:$0xff]  }
  0xc0   :  { %1182 = vmatpush1.bf16.msra.mxu0 %v4973_v58  ;;  %v5063_v58 = vld [vmem:[#allocation7 + $0x20] ss:$12 sps:$4 sm:$0xff]  }
  0xc1   :  { %1183 = vmatprep.subr.bf16.mxu0 %v4978_v59  ;;  %v5067_v59 = vld [vmem:[#allocation7 + $0xf8] ss:$12 sps:$4 sm:$0xff]  }
  0xc2   :  { %1780 = vmatpush1.bf16.msra.mxu1 %v5036_v60  ;;  %v5068_v60 = vld [vmem:[#allocation7 + $0x38] ss:$12 sps:$4 sm:$0xff]  }
  0xc3   :  { %1781 = vmatprep.subr.bf16.mxu1 %v5044_v61  ;;  %v5072_v61 = vld [vmem:[#allocation7 + $0x110] ss:$12 sps:$4 sm:$0xff]  }
  0xc4   :  { %1184 = vmatpush1.bf16.msra.mxu0 %v4976_v62  ;;  %v5073_v62 = vld [vmem:[#allocation7 + $0x50] ss:$12 sps:$4 sm:$0xff]  }
  0xc5   :  { %1185 = vmatprep.subr.bf16.mxu0 %v4981_v63  ;;  %v5077_v63 = vld [vmem:[#allocation7 + $0x128] ss:$12 sps:$4 sm:$0xff]  }
  0xc6   :  { %1782 = vmatpush1.bf16.msra.mxu1 %v5042_v0  ;;  %v5078_v0 = vld [vmem:[#allocation7 + $0x68] ss:$12 sps:$4 sm:$0xff]  }
  0xc7   :  { %1783 = vmatprep.subr.bf16.mxu1 %v5050_v1  ;;  %v5082_v1 = vld [vmem:[#allocation7 + $0x140] ss:$12 sps:$4 sm:$0xff]  }
  0xc8   :  { %1186 = vmatpush1.bf16.msra.mxu0 %v4979_v2  ;;  %v5083_v2 = vld [vmem:[#allocation7 + $0x80] ss:$12 sps:$4 sm:$0xff]  }
  0xc9   :  { %1187 = vmatprep.subr.bf16.mxu0 %v4984_v3  ;;  %v5087_v3 = vld [vmem:[#allocation7 + $0x158] ss:$12 sps:$4 sm:$0xff]  }
  0xca   :  { %1784 = vmatpush1.bf16.msra.mxu1 %v5048_v4  ;;  %v5092_v4 = vld [vmem:[#allocation7 + $0x170] ss:$12 sps:$4 sm:$0xff]  }
  0xcb   :  { %1785 = vmatprep.subr.bf16.mxu1 %v5056_v7  ;;  %v5128_v7 = vld [vmem:[#allocation8 + $0x4] ss:$12 sps:$4 sm:$0xff]  }
  0xcc   :  { %1188 = vmatpush1.bf16.msra.mxu0 %v4982_v6  ;;  %v5093_v6 = vld [vmem:[#allocation7 + $0xb0] ss:$12 sps:$4 sm:$0xff]  }
  0xcd   :  { %1189 = vmatprep.subr.bf16.mxu0 %v4987_v8  ;;  %v233_v8 = vlaneseq }
  0xce   :  { %1786 = vmatpush1.bf16.msra.mxu1 %v5054_v9 }
  0xcf   :  { %1787 = vmatprep.subr.bf16.mxu1 %v5061_v10  ;;  %v5674_v9 = vshrl.u32 %v233_v8, 7  ;;  %v5117_v8 = vld [vmem:[#allocation7 + $0x22c] ss:$12 sps:$4 sm:$0xff]  }
  0xd0   :  { %1190 = vmatpush1.bf16.msra.mxu0 %v4985_v11 }
  0xd1   :  { %1191 = vmatprep.subr.bf16.mxu0 %v4990_v13  ;;  %v5677_v10 = vsub.s32 0, %v5674_v9  ;;  %v5680_v11 = vsub.s32 2, %v5674_v9  ;;  %v5685_v13 = vld [vmem:[%s5843_s2] sm:$0x3f] }
  0xd2   :  { %1788 = vmatpush1.bf16.msra.mxu1 %v5059_v14  ;;  %v5688_v14 = vsub.s32 1, %v5674_v9 }
  0xd3   :  { %1789 = vmatprep.subr.bf16.mxu1 %v5066_v15  ;;  %v247_v15 = vsub.s32 3, %v5674_v9 }
  0xd4   :  { %1192 = vmatpush1.bf16.msra.mxu0 %v4988_v16  ;;  %v236_v16 = vrot.slane %v5685_v13, %v5677_v10 }
  0xd5   :  { %1193 = vmatprep.subr.bf16.mxu0 %v4993_v17  ;;  %v244_v17 = vrot.slane %v5685_v13, %v5680_v11 }
  0xd6   :  { %1790 = vmatpush1.bf16.msra.mxu1 %v5064_v18  ;;  %v240_v18 = vrot.slane %v5685_v13, %v5688_v14 }
  0xd7   :  { %1791 = vmatprep.subr.bf16.mxu1 %v5071_v19  ;;  %v248_v19 = vrot.slane %v5685_v13, %v247_v15  ;;  %v5115_v15 = vld [vmem:[#allocation7 + $0x228] ss:$12 sps:$4 sm:$0xff]  }
  0xd8   :  { %1194 = vmatpush1.bf16.msra.mxu0 %v4991_v20 }
  0xd9   :  { %1195 = vmatprep.subr.bf16.mxu0 %v4996_v21 }
  0xda   :  { %1792 = vmatpush1.bf16.msra.mxu1 %v5069_v22 }
  0xdb   :  { %1793 = vmatprep.subr.bf16.mxu1 %v5076_v23 }
  0xdc   :  { %1196 = vmatpush1.bf16.msra.mxu0 %v4994_v24 }
  0xdd   :  { %1197 = vmatprep.subr.bf16.mxu0 %v4999_v25 }
  0xde   :  { %1794 = vmatpush1.bf16.msra.mxu1 %v5074_v26 }
  0xdf   :  { %1795 = vmatprep.subr.bf16.mxu1 %v5081_v27 }
  0xe0   :  { %1198 = vmatpush1.bf16.msra.mxu0 %v4997_v28 }
  0xe1   :  { %1199 = vmatprep.subr.bf16.mxu0 %v5002_v29 }
  0xe2   :  { %1796 = vmatpush1.bf16.msra.mxu1 %v5079_v30 }
  0xe3   :  { %1797 = vmatprep.subr.bf16.mxu1 %v5086_v48 }
  0xe4   :  { %1200 = vmatpush1.bf16.msra.mxu0 %v5000_v31 }
  0xe5   :  { %1201 = vmatprep.subr.bf16.mxu0 %v5005_v32 }
  0xe6   :  { %1798 = vmatpush1.bf16.msra.mxu1 %v5084_v50  ;;  %v5099_v50 = vld [vmem:[#allocation7 + $0x19c] ss:$12 sps:$4 sm:$0xff]  }
  0xe7   :  { %1799 = vmatprep.subr.bf16.mxu1 %v5091_v52  ;;  %v5131_v52 = vld [vmem:[#allocation8 + $0x1c] ss:$12 sps:$4 sm:$0xff]  }
  0xe8   :  { %1202 = vmatpush1.bf16.msra.mxu0 %v5003_v33 }
  0xe9   :  { %1214 = vmatprep.subr.bf16.mxu0 %v5011_v34 }
  0xea   :  { %1800 = vmatpush1.bf16.msra.mxu1 %v5089_v47  ;;  %v5102_v47 = vld [vmem:[#allocation7 + $0x1b4] ss:$12 sps:$4 sm:$0xff]  }
  0xeb   :  { %1204 = vmatmul.mubr.bf16.vlgmr.msra.gmra.mrb[4].mxu0 %v5660_v5  ;;  %v5047_v5 = vld [vmem:[#allocation5 + $0x434] ss:$24 sps:$4 sm:$0xff]   ;;  %1812 = vmatprep.subr.bf16.mxu1 %v5096_v56  ;;  %v5100_v56 = vld [vmem:[#allocation7 + $0x1b0] ss:$12 sps:$4 sm:$0xff]  }
  0xec   :  { %1215 = vmatpush1.bf16.msra.mxu0 %v5009_v35  ;;  %1246 = vmatprep.mubr.bf16.mxu0 %v5548_v12 }
  0xed   :  { %1216 = vmatprep.subr.bf16.mxu0 %v5017_v36 }
  0xf0   :  { %1217 = vmatpush1.bf16.msra.mxu0 %v5015_v38 }
  0xf1   :  { %1218 = vmatprep.subr.bf16.mxu0 %v5023_v39 }
  0xf4   :  { %1219 = vmatpush1.bf16.msra.mxu0 %v5021_v40 }
  0xf5   :  { %1220 = vmatprep.subr.bf16.mxu0 %v5029_v41 }
  0xf8   :  { %1221 = vmatpush1.bf16.msra.mxu0 %v5027_v42 }
  0xf9   :  { %1222 = vmatprep.subr.bf16.mxu0 %v5035_v43 }
  0xfc   :  { %1223 = vmatpush1.bf16.msra.mxu0 %v5033_v44 }
  0xfd   :  { %1224 = vmatprep.subr.bf16.mxu0 %v5041_v45 }
 0x100   :  { %1225 = vmatpush1.bf16.msra.mxu0 %v5039_v46 }
 0x101   :  { %1226 = vmatprep.subr.bf16.mxu0 %v5047_v5 }
 0x104   :  { %1227 = vmatpush1.bf16.msra.mxu0 %v5045_v49  ;;  %v5094_v49 = vld [vmem:[#allocation7 + $0x180] ss:$12 sps:$4 sm:$0xff]  }
 0x105   :  { %1228 = vmatprep.subr.bf16.mxu0 %v5053_v51  ;;  %v5126_v51 = vld [vmem:[#allocation8] ss:$12 sps:$4 sm:$0xff]  }
 0x108   :  { %1229 = vmatpush1.bf16.msra.mxu0 %v5051_v53  ;;  %v5097_v53 = vld [vmem:[#allocation7 + $0x198] ss:$12 sps:$4 sm:$0xff]  }
 0x109   :  { %4538 = vmatprep.subr.bf16.mxu0 %v5057_v54  ;;  %v5129_v54 = vld [vmem:[#allocation8 + $0x18] ss:$12 sps:$4 sm:$0xff]  }
 0x10b   :  { %1247 = vmatmul.mubr.bf16.vlgmr.msra.gmra.mrb[4].mxu0 %v5666_v37  ;;  %v5088_v37 = vld [vmem:[#allocation7 + $0x98] ss:$12 sps:$4 sm:$0xff]  }
 0x10c   :  { %4539 = vmatpush3.bf16.msra.mxu0 %v5058_v55  ;;  %v5134_v55 = vld [vmem:[#allocation8 + $0x34] ss:$12 sps:$4 sm:$0xff]  }
 0x10d   :  { %4540 = vmatprep.subr.bf16.mxu0 %v5062_v57  ;;  %v5105_v57 = vld [vmem:[#allocation7 + $0x1cc] ss:$12 sps:$4 sm:$0xff]  }
 0x110   :  { %4541 = vmatpush3.bf16.msra.mxu0 %v5063_v58  ;;  %v5132_v58 = vld [vmem:[#allocation8 + $0x30] ss:$12 sps:$4 sm:$0xff]  }
 0x111   :  { %4542 = vmatprep.subr.bf16.mxu0 %v5067_v59  ;;  %v5137_v59 = vld [vmem:[#allocation8 + $0x4c] ss:$12 sps:$4 sm:$0xff]  }
 0x114   :  { %4543 = vmatpush3.bf16.msra.mxu0 %v5068_v60  ;;  %v5103_v60 = vld [vmem:[#allocation7 + $0x1c8] ss:$12 sps:$4 sm:$0xff]  }
 0x115   :  { %4544 = vmatprep.subr.bf16.mxu0 %v5072_v61  ;;  %v5108_v61 = vld [vmem:[#allocation7 + $0x1e4] ss:$12 sps:$4 sm:$0xff]  }
 0x118   :  { %4545 = vmatpush3.bf16.msra.mxu0 %v5073_v62  ;;  %v5135_v62 = vld [vmem:[#allocation8 + $0x48] ss:$12 sps:$4 sm:$0xff]  }
 0x119   :  { %4546 = vmatprep.subr.bf16.mxu0 %v5077_v63  ;;  %v5140_v63 = vld [vmem:[#allocation8 + $0x64] ss:$12 sps:$4 sm:$0xff]  }
 0x11c   :  { %4547 = vmatpush3.bf16.msra.mxu0 %v5078_v0  ;;  %v5106_v0 = vld [vmem:[#allocation7 + $0x1e0] ss:$12 sps:$4 sm:$0xff]  }
 0x11d   :  { %4548 = vmatprep.subr.bf16.mxu0 %v5082_v1  ;;  %v5111_v1 = vld [vmem:[#allocation7 + $0x1fc] ss:$12 sps:$4 sm:$0xff]  }
 0x120   :  { %4549 = vmatpush3.bf16.msra.mxu0 %v5083_v2  ;;  %v5138_v2 = vld [vmem:[#allocation8 + $0x60] ss:$12 sps:$4 sm:$0xff]  }
 0x121   :  { %4550 = vmatprep.subr.bf16.mxu0 %v5087_v3  ;;  %v5143_v3 = vld [vmem:[#allocation8 + $0x7c] ss:$12 sps:$4 sm:$0xff]  }
 0x124   :  { %4551 = vmatpush3.bf16.msra.mxu0 %v5088_v37  ;;  %v5109_v37 = vld [vmem:[#allocation7 + $0x1f8] ss:$12 sps:$4 sm:$0xff]  }
 0x125   :  { %4552 = vmatprep.subr.bf16.mxu0 %v5092_v4  ;;  %v5114_v4 = vld [vmem:[#allocation7 + $0x214] ss:$12 sps:$4 sm:$0xff]  }
 0x128   :  { %4553 = vmatpush3.bf16.msra.mxu0 %v5093_v6  ;;  %v5141_v6 = vld [vmem:[#allocation8 + $0x78] ss:$12 sps:$4 sm:$0xff]  }
 0x129   :  { %2443 = vmatprep.subr.bf16.mxu0 %v5128_v7  ;;  %v5112_v7 = vld [vmem:[#allocation7 + $0x210] ss:$12 sps:$4 sm:$0xff]  }
 0x17e   :  { %v1076_v20 = vpop.f32.mrb[0].mxu0 }
 0x17f   :  { %v1162_v21 = vpop.f32.mrb[0].mxu1  ;;  %v4742_v22 = vadd.f32 %v1076_v20, %v236_v16  ;;  %v1078_v24 = vpop.f32.mrb[1].mxu0  ;;  %v5121_v20 = vld [vmem:[#allocation7 + $0x1d0] ss:$12 sps:$4 sm:$0xff]  }
 0x180   :  { %v4746_v23 = vadd.f32 %v1162_v21, %v244_v17  ;;  %v1164_v25 = vpop.f32.mrb[1].mxu1  ;;  %v4743_v26 = vadd.f32 %v1078_v24, %v240_v18  ;;  %v1080_v28 = vpop.f32.mrb[2].mxu0  ;;  %v5122_v21 = vld [vmem:[#allocation7 + $0x1e8] ss:$12 sps:$4 sm:$0xff]   ;;  %v5125_v24 = vld [vmem:[#allocation7 + $0x230] ss:$12 sps:$4 sm:$0xff]  }
 0x181   :  { %v4747_v27 = vadd.f32 %v1164_v25, %v248_v19  ;;  %v1166_v29 = vpop.f32.mrb[2].mxu1  ;;  %v4744_v31 = vadd.f32 %v1080_v28, %v236_v16  ;;  %v1082_v33 = vpop.f32.mrb[3].mxu0  ;;  %v1257_v39 = vmax.f32 %v4742_v22, 0.0  ;;  %v5118_v16 = vld [vmem:[#allocation7 + $0x188] ss:$12 sps:$4 sm:$0xff]   ;;  %v251_v25 = vsub.s32 4, %v5674_v9 }
 0x182   :  { %v1259_v30 = vmax.f32 %v4746_v23, 0.0  ;;  %v4748_v32 = vadd.f32 %v1166_v29, %v244_v17  ;;  %v1168_v34 = vpop.f32.mrb[3].mxu1  ;;  %v4745_v36 = vadd.f32 %v1082_v33, %v240_v18  ;;  %v1258_v42 = vmax.f32 %v4743_v26, 0.0  ;;  %v5119_v18 = vld [vmem:[#allocation7 + $0x1a0] ss:$12 sps:$4 sm:$0xff]  }
 0x183   :  { %v1260_v35 = vmax.f32 %v4747_v27, 0.0  ;;  %v4749_v38 = vadd.f32 %v1168_v34, %v248_v19  ;;  %v1263_v40 = vmax.f32 %v4744_v31, 0.0  ;;  %v5549_v17 = vmov 0.0   ;;  %v5120_v19 = vld [vmem:[#allocation7 + $0x1b8] ss:$12 sps:$4 sm:$0xff]  }
 0x184   :  { %v1265_v41 = vmax.f32 %v4748_v32, 0.0  ;;  %v1264_v43 = vmax.f32 %v4745_v36, 0.0  ;;  %v5123_v22 = vld [vmem:[#allocation7 + $0x200] ss:$12 sps:$4 sm:$0xff]   ;;  %v5124_v23 = vld [vmem:[#allocation7 + $0x218] ss:$12 sps:$4 sm:$0xff]   ;;  %v252_v27 = vrot.slane %v5685_v13, %v251_v25 }
 0x185   :  { %v1266_v44 = vmax.f32 %v4749_v38, 0.0  ;;  %v1269_v45 = vpack.c.bf16 %v1263_v40, %v1257_v39  ;;  %v255_v26 = vsub.s32 5, %v5674_v9  ;;  %v5146_v29 = vld [vmem:[#allocation8 + $0x94] ss:$12 sps:$4 sm:$0xff]   ;;  %v5149_v38 = vld [vmem:[#allocation8 + $0xac] ss:$12 sps:$4 sm:$0xff]  }
 0x186   :  { %v5698_v46 = vpack.c.bf16 %v1265_v41, %v1259_v30  ;;  %v1270_v5 = vpack.c.bf16 %v1264_v43, %v1258_v42  ;;  %v5144_v30 = vld [vmem:[#allocation8 + $0x90] ss:$12 sps:$4 sm:$0xff]   ;;  %v5147_v36 = vld [vmem:[#allocation8 + $0xa8] ss:$12 sps:$4 sm:$0xff]  }
 0x187   :  { %v5700_v48 = vpack.c.bf16 %v1266_v44, %v1260_v35  ;;  %v256_v28 = vrot.slane %v5685_v13, %v255_v26  ;;  %v5152_v42 = vld [vmem:[#allocation8 + $0xc4] ss:$12 sps:$4 sm:$0xff]   ;;  %v5153_v44 = vld [vmem:[#allocation8 + $0xc8] ss:$12 sps:$4 sm:$0xff]  }
 0x188   :  { %1801 = vmatprep.mubr.bf16.mxu1 %v1270_v5  ;;  %1887 = vmatprep.mubr.bf16.mxu0 %v1270_v5  ;;  %v5154_v13 = vld [vmem:[#allocation8 + $0x8] ss:$12 sps:$4 sm:$0xff]  }
 0x189   :  { %1802 = vmatmul.mubr.bf16.vlgmr.msra.gmra.mrb[4].mxu1 %v1269_v45  ;;  %1888 = vmatmul.mubr.bf16.vlgmr.msra.gmra.mrb[8].mxu0 %v1269_v45 }
 0x18a   :  { %1813 = vmatpush1.bf16.msra.mxu1 %v5094_v49  ;;  %1844 = vmatprep.mubr.bf16.mxu1 %v5548_v12  ;;  %v5157_v49 = vld [vmem:[#allocation8 + $0xdc] ss:$12 sps:$4 sm:$0xff]  }
 0x18b   :  { %1814 = vmatprep.subr.bf16.mxu1 %v5099_v50  ;;  %2444 = vmatpush1.bf16.msra.mxu0 %v5126_v51  ;;  %v5158_v50 = vld [vmem:[#allocation8 + $0xe0] ss:$12 sps:$4 sm:$0xff]  }
 0x18c   :  { %2445 = vmatprep.subr.bf16.mxu0 %v5131_v52  ;;  %v5159_v52 = vld [vmem:[#allocation8 + $0x20] ss:$12 sps:$4 sm:$0xff]  }
 0x18e   :  { %1815 = vmatpush1.bf16.msra.mxu1 %v5097_v53 }
 0x18f   :  { %1816 = vmatprep.subr.bf16.mxu1 %v5102_v47  ;;  %2446 = vmatpush1.bf16.msra.mxu0 %v5129_v54  ;;  %v5163_v47 = vld [vmem:[#allocation8 + $0xf8] ss:$12 sps:$4 sm:$0xff]  }
 0x190   :  { %2447 = vmatprep.subr.bf16.mxu0 %v5134_v55  ;;  %v5155_v54 = vld [vmem:[#allocation8 + $0xd8] ss:$12 sps:$4 sm:$0xff]   ;;  %v5162_v55 = vld [vmem:[#allocation8 + $0xf4] ss:$12 sps:$4 sm:$0xff]  }
 0x192   :  { %1817 = vmatpush1.bf16.msra.mxu1 %v5100_v56  ;;  %v5164_v56 = vld [vmem:[#allocation8 + $0x38] ss:$12 sps:$4 sm:$0xff]  }
 0x193   :  { %1818 = vmatprep.subr.bf16.mxu1 %v5105_v57  ;;  %2448 = vmatpush1.bf16.msra.mxu0 %v5132_v58  ;;  %v5168_v57 = vld [vmem:[#allocation8 + $0x110] ss:$12 sps:$4 sm:$0xff]  }
 0x194   :  { %2449 = vmatprep.subr.bf16.mxu0 %v5137_v59  ;;  %v5160_v58 = vld [vmem:[#allocation8 + $0xf0] ss:$12 sps:$4 sm:$0xff]   ;;  %v5167_v59 = vld [vmem:[#allocation8 + $0x10c] ss:$12 sps:$4 sm:$0xff]  }
 0x196   :  { %1819 = vmatpush1.bf16.msra.mxu1 %v5103_v60  ;;  %v5169_v60 = vld [vmem:[#allocation8 + $0x50] ss:$12 sps:$4 sm:$0xff]  }
 0x197   :  { %1820 = vmatprep.subr.bf16.mxu1 %v5108_v61  ;;  %2450 = vmatpush1.bf16.msra.mxu0 %v5135_v62  ;;  %v5173_v61 = vld [vmem:[#allocation8 + $0x128] ss:$12 sps:$4 sm:$0xff]  }
 0x198   :  { %2451 = vmatprep.subr.bf16.mxu0 %v5140_v63  ;;  %v5165_v62 = vld [vmem:[#allocation8 + $0x108] ss:$12 sps:$4 sm:$0xff]   ;;  %v5172_v63 = vld [vmem:[#allocation8 + $0x124] ss:$12 sps:$4 sm:$0xff]  }
 0x19a   :  { %1821 = vmatpush1.bf16.msra.mxu1 %v5106_v0  ;;  %v5174_v0 = vld [vmem:[#allocation8 + $0x68] ss:$12 sps:$4 sm:$0xff]  }
 0x19b   :  { %1822 = vmatprep.subr.bf16.mxu1 %v5111_v1  ;;  %2452 = vmatpush1.bf16.msra.mxu0 %v5138_v2  ;;  %v5178_v1 = vld [vmem:[#allocation8 + $0x140] ss:$12 sps:$4 sm:$0xff]  }
 0x19c   :  { %2453 = vmatprep.subr.bf16.mxu0 %v5143_v3  ;;  %v5170_v2 = vld [vmem:[#allocation8 + $0x120] ss:$12 sps:$4 sm:$0xff]   ;;  %v5177_v3 = vld [vmem:[#allocation8 + $0x13c] ss:$12 sps:$4 sm:$0xff]  }
 0x19e   :  { %1823 = vmatpush1.bf16.msra.mxu1 %v5109_v37  ;;  %v5179_v37 = vld [vmem:[#allocation8 + $0x80] ss:$12 sps:$4 sm:$0xff]  }
 0x19f   :  { %1824 = vmatprep.subr.bf16.mxu1 %v5114_v4  ;;  %2454 = vmatpush1.bf16.msra.mxu0 %v5141_v6  ;;  %v5175_v4 = vld [vmem:[#allocation8 + $0x138] ss:$12 sps:$4 sm:$0xff]   ;;  %v5182_v6 = vld [vmem:[#allocation8 + $0x154] ss:$12 sps:$4 sm:$0xff]  }
 0x1a0   :  { %2455 = vmatprep.subr.bf16.mxu0 %v5146_v29 }
 0x1a2   :  { %1825 = vmatpush1.bf16.msra.mxu1 %v5112_v7  ;;  %v5183_v7 = vld [vmem:[#allocation8 + $0x158] ss:$12 sps:$4 sm:$0xff]  }
 0x1a3   :  { %1826 = vmatprep.subr.bf16.mxu1 %v5117_v8  ;;  %2456 = vmatpush1.bf16.msra.mxu0 %v5144_v30  ;;  %v5180_v8 = vld [vmem:[#allocation8 + $0x150] ss:$12 sps:$4 sm:$0xff]  }
 0x1a4   :  { %2457 = vmatprep.subr.bf16.mxu0 %v5149_v38 }
 0x1a6   :  { %1827 = vmatpush1.bf16.msra.mxu1 %v5115_v15  ;;  %v5184_v15 = vld [vmem:[#allocation8 + $0x98] ss:$12 sps:$4 sm:$0xff]  }
 0x1a7   :  { %4662 = vmatprep.subr.bf16.mxu1 %v5549_v17  ;;  %2458 = vmatpush1.bf16.msra.mxu0 %v5147_v36 }
 0x1a8   :  { %2459 = vmatprep.subr.bf16.mxu0 %v5152_v42 }
 0x1a9   :  { %1845 = vmatmul.mubr.bf16.vlgmr.msra.gmra.mrb[4].mxu1 %v5698_v46 }
 0x1aa   :  { %4663 = vmatpush3.bf16.msra.mxu1 %v5118_v16  ;;  %4678 = vmatprep.mubr.msk.bf16.mxu1 %vm5550_vm0, %v5549_v17  ;;  %v5187_v16 = vld [vmem:[#allocation8 + $0x16c] ss:$12 sps:$4 sm:$0xff]  }
 0x1ab   :  { %4664 = vmatprep.subr.bf16.mxu1 %v5549_v17 }
 0x1ae   :  { %4665 = vmatpush3.bf16.msra.mxu1 %v5119_v18  ;;  %v5188_v18 = vld [vmem:[#allocation8 + $0x170] ss:$12 sps:$4 sm:$0xff]  }
 0x1af   :  { %4666 = vmatprep.subr.bf16.mxu1 %v5549_v17 }
 0x1b2   :  { %4667 = vmatpush3.bf16.msra.mxu1 %v5120_v19  ;;  %v5185_v19 = vld [vmem:[#allocation8 + $0x168] ss:$12 sps:$4 sm:$0xff]  }
 0x1b3   :  { %4668 = vmatprep.subr.bf16.mxu1 %v5549_v17 }
 0x1b6   :  { %4669 = vmatpush3.bf16.msra.mxu1 %v5121_v20  ;;  %v5189_v20 = vld [vmem:[#allocation8 + $0xb0] ss:$12 sps:$4 sm:$0xff]  }
 0x1b7   :  { %4670 = vmatprep.subr.bf16.mxu1 %v5549_v17 }
 0x1ba   :  { %4671 = vmatpush3.bf16.msra.mxu1 %v5122_v21  ;;  %v5192_v21 = vld [vmem:[#allocation8 + $0x184] ss:$12 sps:$4 sm:$0xff]  }
 0x1bb   :  { %4672 = vmatprep.subr.bf16.mxu1 %v5549_v17 }
 0x1be   :  { %4673 = vmatpush3.bf16.msra.mxu1 %v5123_v22 }
 0x1bf   :  { %4674 = vmatprep.subr.bf16.mxu1 %v5549_v17 }
 0x1c2   :  { %4675 = vmatpush3.bf16.msra.mxu1 %v5124_v23 }
 0x1c3   :  { %4676 = vmatprep.subr.bf16.mxu1 %v5549_v17 }
 0x1c6   :  { %4677 = vmatpush3.bf16.msra.mxu1 %v5125_v24 }
 0x1c7   :  { %4569 = vmatprep.subr.bf16.mxu1 %v5153_v44 }
 0x1c9   :  { %4679 = vmatmul.mubr.bf16.vlgmr.msra.gmra.mrb[8].mxu1 %v5698_v46  ;;  %v5150_v46 = vld [vmem:[#allocation8 + $0xc0] ss:$12 sps:$4 sm:$0xff]  }
 0x1ca   :  { %4570 = vmatpush3.bf16.msra.mxu1 %v5154_v13  ;;  %2460 = vmatpush1.bf16.msra.mxu0 %v5150_v46  ;;  %v5190_v13 = vld [vmem:[#allocation8 + $0x180] ss:$12 sps:$4 sm:$0xff]   ;;  %v5196_v46 = vld [vmem:[#allocation8 + $0x19c] ss:$12 sps:$4 sm:$0xff]  }
 0x1cb   :  { %4571 = vmatprep.subr.bf16.mxu1 %v5158_v50  ;;  %2461 = vmatprep.subr.bf16.mxu0 %v5157_v49  ;;  %v5197_v49 = vld [vmem:[#allocation8 + $0x1a0] ss:$12 sps:$4 sm:$0xff]  }
 0x1cc   :  { %v5200_v50 = vld [vmem:[#allocation8 + $0x1b4] ss:$12 sps:$4 sm:$0xff]  }
 0x1ce   :  { %4572 = vmatpush3.bf16.msra.mxu1 %v5159_v52  ;;  %2462 = vmatpush1.bf16.msra.mxu0 %v5155_v54  ;;  %v5198_v52 = vld [vmem:[#allocation8 + $0x1b0] ss:$12 sps:$4 sm:$0xff]   ;;  %v5204_v54 = vld [vmem:[#allocation8 + $0x1cc] ss:$12 sps:$4 sm:$0xff]  }
 0x1cf   :  { %4573 = vmatprep.subr.bf16.mxu1 %v5163_v47  ;;  %2463 = vmatprep.subr.bf16.mxu0 %v5162_v55  ;;  %v5201_v47 = vld [vmem:[#allocation8 + $0x1b8] ss:$12 sps:$4 sm:$0xff]   ;;  %v5202_v55 = vld [vmem:[#allocation8 + $0x1c8] ss:$12 sps:$4 sm:$0xff]  }
 0x1d2   :  { %4574 = vmatpush3.bf16.msra.mxu1 %v5164_v56  ;;  %2464 = vmatpush1.bf16.msra.mxu0 %v5160_v58  ;;  %v5205_v56 = vld [vmem:[#allocation8 + $0x1d0] ss:$12 sps:$4 sm:$0xff]   ;;  %v5206_v58 = vld [vmem:[#allocation8 + $0x1e0] ss:$12 sps:$4 sm:$0xff]  }
 0x1d3   :  { %4575 = vmatprep.subr.bf16.mxu1 %v5168_v57  ;;  %2465 = vmatprep.subr.bf16.mxu0 %v5167_v59  ;;  %v5208_v57 = vld [vmem:[#allocation8 + $0x1e4] ss:$12 sps:$4 sm:$0xff]   ;;  %v5209_v59 = vld [vmem:[#allocation8 + $0x1e8] ss:$12 sps:$4 sm:$0xff]  }
 0x1d6   :  { %4576 = vmatpush3.bf16.msra.mxu1 %v5169_v60  ;;  %2466 = vmatpush1.bf16.msra.mxu0 %v5165_v62  ;;  %v5212_v60 = vld [vmem:[#allocation8 + $0x1fc] ss:$12 sps:$4 sm:$0xff]   ;;  %v5210_v62 = vld [vmem:[#allocation8 + $0x1f8] ss:$12 sps:$4 sm:$0xff]  }
 0x1d7   :  { %4577 = vmatprep.subr.bf16.mxu1 %v5173_v61  ;;  %2467 = vmatprep.subr.bf16.mxu0 %v5172_v63  ;;  %v5213_v63 = vld [vmem:[#allocation8 + $0x200] ss:$12 sps:$4 sm:$0xff]  }
 0x1da   :  { %4578 = vmatpush3.bf16.msra.mxu1 %v5174_v0  ;;  %2468 = vmatpush1.bf16.msra.mxu0 %v5170_v2  ;;  %v5216_v0 = vld [vmem:[#allocation8 + $0x214] ss:$12 sps:$4 sm:$0xff]  }
 0x1db   :  { %4579 = vmatprep.subr.bf16.mxu1 %v5178_v1  ;;  %2469 = vmatprep.subr.bf16.mxu0 %v5177_v3  ;;  %v5214_v3 = vld [vmem:[#allocation8 + $0x210] ss:$12 sps:$4 sm:$0xff]  }
 0x1de   :  { %v1248_v31 = vpop.f32.mrb[4].mxu0  ;;  %4580 = vmatpush3.bf16.msra.mxu1 %v5179_v37  ;;  %2470 = vmatpush1.bf16.msra.mxu0 %v5175_v4  ;;  %v5217_v37 = vld [vmem:[#allocation8 + $0x218] ss:$12 sps:$4 sm:$0xff]  }
 0x1df   :  { %v4750_v32 = vadd.f32 %v1248_v31, %v252_v27  ;;  %v1250_v33 = vpop.f32.mrb[5].mxu0  ;;  %2471 = vmatprep.subr.bf16.mxu0 %v5182_v6  ;;  %4581 = vmatprep.subr.bf16.mxu1 %v5183_v7 }
 0x1e0   :  { %v4751_v34 = vadd.f32 %v1250_v33, %v256_v28  ;;  %v1252_v35 = vpop.f32.mrb[6].mxu0 }
 0x1e1   :  { %v1261_v39 = vmax.f32 %v4750_v32, 0.0  ;;  %v4752_v40 = vadd.f32 %v1252_v35, %v252_v27  ;;  %v1254_v41 = vpop.f32.mrb[7].mxu0 }
 0x1e2   :  { %v1262_v9 = vmax.f32 %v4751_v34, 0.0  ;;  %v4753_v43 = vadd.f32 %v1254_v41, %v256_v28  ;;  %2472 = vmatpush1.bf16.msra.mxu0 %v5180_v8  ;;  %4582 = vmatpush3.bf16.msra.mxu1 %v5184_v15  ;;  %v1368_v28 = vld [vmem:[%s5845_s4] sm:$0x7]  ;;  %v5220_v8 = vld [vmem:[#allocation8 + $0x22c] ss:$12 sps:$4 sm:$0xff]  }
 0x1e3   :  { %v1267_v45 = vmax.f32 %v4752_v40, 0.0  ;;  %2473 = vmatprep.subr.bf16.mxu0 %v5187_v16  ;;  %4583 = vmatprep.subr.bf16.mxu1 %v5188_v18  ;;  %v1373_v29 = vrot.slane %v1368_v28, %v5677_v10  ;;  %v1377_v30 = vrot.slane %v1368_v28, %v5688_v14  ;;  %v1381_v61 = vrot.slane %v1368_v28, %v5680_v11  ;;  %v5229_v28 = vld [vmem:[#allocation7 + $0x25c] ss:$12 sps:$4 sm:$0xff]  }
 0x1e4   :  { %v1268_v5 = vmax.f32 %v4753_v43, 0.0 }
 0x1e5   :  { %v5719_v51 = vpack.c.bf16 %v1267_v45, %v1261_v39  ;;  %v5193_v45 = vld [vmem:[#allocation8 + $0x188] ss:$12 sps:$4 sm:$0xff]  }
 0x1e6   :  { %v5721_v53 = vpack.c.bf16 %v1268_v5, %v1262_v9  ;;  %2474 = vmatpush1.bf16.msra.mxu0 %v5185_v19  ;;  %4584 = vmatpush3.bf16.msra.mxu1 %v5189_v20  ;;  %v5194_v5 = vld [vmem:[#allocation8 + $0x198] ss:$12 sps:$4 sm:$0xff]   ;;  %v5218_v19 = vld [vmem:[#allocation8 + $0x228] ss:$12 sps:$4 sm:$0xff]   ;;  %v5221_v20 = vld [vmem:[#allocation8 + $0x230] ss:$12 sps:$4 sm:$0xff]  }
 0x1e7   :  { %4682 = vmatprep.subr.bf16.mxu1 %v5549_v17  ;;  %2486 = vmatprep.subr.bf16.mxu0 %v5192_v21 }
 0x25c   :  { %v4554_v22 = vpop.f32.mrb[8].mxu0 }
 0x25d   :  { %v4555_v23 = vpop.f32.mrb[9].mxu0 }
 0x25e   :  { %v5724_v24 = vadd.f32 %v4555_v23, %v4554_v22  ;;  %v4557_v25 = vpop.f32.mrb[10].mxu0  ;;  %v5224_v23 = vld [vmem:[#allocation7 + $0x244] ss:$12 sps:$4 sm:$0xff]  }
 0x25f   :  { %v4558_v26 = vpop.f32.mrb[11].mxu0 }
 0x260   :  { %v5726_v27 = vadd.f32 %v4558_v26, %v4557_v25  ;;  %v1890_v1 = vadd.f32 %v5724_v24, %v1381_v61  ;;  %v5225_v24 = vld [vmem:[#allocation7 + $0x308] ss:$12 sps:$4 sm:$0xff]   ;;  %v5222_v26 = vld [vmem:[#allocation7 + $0x240] ss:$12 sps:$4 sm:$0xff]  }
 0x262   :  { %v1893_v7 = vadd.f32 %v5726_v27, %v1381_v61  ;;  %v5226_v27 = vld [vmem:[#allocation7 + $0x248] ss:$12 sps:$4 sm:$0xff]   ;;  %v5269_v61 = vld [vmem:[#allocation7 + $0x3e0] ss:$12 sps:$4 sm:$0xff]  }
 0x27c   :  { %v1846_v31 = vpop.f32.mrb[4].mxu1 }
 0x27d   :  { %v4754_v32 = vadd.f32 %v1846_v31, %v1373_v29  ;;  %v1848_v33 = vpop.f32.mrb[5].mxu1  ;;  %v5231_v31 = vld [vmem:[#allocation7 + $0x260] ss:$12 sps:$4 sm:$0xff]  }
 0x27e   :  { %v4755_v34 = vadd.f32 %v1848_v33, %v1377_v30  ;;  %v1850_v35 = vpop.f32.mrb[6].mxu1  ;;  %v5235_v33 = vld [vmem:[#allocation7 + $0x338] ss:$12 sps:$4 sm:$0xff]  }
 0x27f   :  { %v4756_v36 = vadd.f32 %v1850_v35, %v1373_v29  ;;  %v1852_v38 = vpop.f32.mrb[7].mxu1  ;;  %v1937_v40 = vmax.f32 %v4754_v32, 0.0  ;;  %v5230_v29 = vld [vmem:[#allocation7 + $0x320] ss:$12 sps:$4 sm:$0xff]   ;;  %v5236_v35 = vld [vmem:[#allocation7 + $0x278] ss:$12 sps:$4 sm:$0xff]  }
 0x280   :  { %v4757_v39 = vadd.f32 %v1852_v38, %v1377_v30  ;;  %v1938_v42 = vmax.f32 %v4755_v34, 0.0  ;;  %v5227_v30 = vld [vmem:[#allocation7 + $0x258] ss:$12 sps:$4 sm:$0xff]   ;;  %v5234_v32 = vld [vmem:[#allocation7 + $0x274] ss:$12 sps:$4 sm:$0xff]  }
 0x281   :  { %v1940_v41 = vmax.f32 %v4756_v36, 0.0  ;;  %v5232_v34 = vld [vmem:[#allocation7 + $0x270] ss:$12 sps:$4 sm:$0xff]   ;;  %v5239_v36 = vld [vmem:[#allocation7 + $0x28c] ss:$12 sps:$4 sm:$0xff]  }
 0x282   :  { %v1941_v9 = vmax.f32 %v4757_v39, 0.0  ;;  %v5240_v38 = vld [vmem:[#allocation7 + $0x350] ss:$12 sps:$4 sm:$0xff]   ;;  %v5237_v39 = vld [vmem:[#allocation7 + $0x288] ss:$12 sps:$4 sm:$0xff]  }
 0x283   :  { %v1943_v43 = vpack.c.bf16 %v1940_v41, %v1937_v40  ;;  %v5241_v40 = vld [vmem:[#allocation7 + $0x290] ss:$12 sps:$4 sm:$0xff]  }
 0x284   :  { %v1944_v44 = vpack.c.bf16 %v1941_v9, %v1938_v42  ;;  %v5244_v41 = vld [vmem:[#allocation7 + $0x2a4] ss:$12 sps:$4 sm:$0xff]   ;;  %v5242_v42 = vld [vmem:[#allocation7 + $0x2a0] ss:$12 sps:$4 sm:$0xff]   ;;  %v5246_v9 = vld [vmem:[#allocation7 + $0x2a8] ss:$12 sps:$4 sm:$0xff]  }
 0x286   :  { %2475 = vmatprep.mubr.bf16.mxu0 %v1944_v44  ;;  %2561 = vmatprep.mubr.bf16.mxu1 %v1944_v44  ;;  %v5250_v44 = vld [vmem:[#allocation7 + $0x380] ss:$12 sps:$4 sm:$0xff]  }
 0x287   :  { %2476 = vmatmul.mubr.bf16.vlgmr.msra.gmra.mrb[12].mxu0 %v1943_v43  ;;  %2562 = vmatmul.mubr.bf16.vlgmr.msra.gmra.mrb[12].mxu1 %v1943_v43  ;;  %v5249_v43 = vld [vmem:[#allocation7 + $0x2bc] ss:$12 sps:$4 sm:$0xff]  }
 0x288   :  { %2487 = vmatpush1.bf16.msra.mxu0 %v5190_v13  ;;  %4683 = vmatpush3.bf16.msra.mxu1 %v5193_v45  ;;  %v5247_v13 = vld [vmem:[#allocation7 + $0x2b8] ss:$12 sps:$4 sm:$0xff]   ;;  %v5251_v45 = vld [vmem:[#allocation7 + $0x2c0] ss:$12 sps:$4 sm:$0xff]  }
 0x289   :  { %2488 = vmatprep.subr.bf16.mxu0 %v5196_v46  ;;  %4684 = vmatprep.subr.bf16.mxu1 %v5549_v17  ;;  %v5254_v46 = vld [vmem:[#allocation7 + $0x2d4] ss:$12 sps:$4 sm:$0xff]  }
 0x28a   :  { %2518 = vmatprep.mubr.bf16.mxu0 %v5548_v12  ;;  %4698 = vmatprep.mubr.msk.bf16.mxu1 %vm5550_vm0, %v5549_v17 }
 0x28c   :  { %2489 = vmatpush1.bf16.msra.mxu0 %v5194_v5  ;;  %4685 = vmatpush3.bf16.msra.mxu1 %v5197_v49  ;;  %v5255_v5 = vld [vmem:[#allocation7 + $0x398] ss:$12 sps:$4 sm:$0xff]   ;;  %v5252_v49 = vld [vmem:[#allocation7 + $0x2d0] ss:$12 sps:$4 sm:$0xff]  }
 0x28d   :  { %2490 = vmatprep.subr.bf16.mxu0 %v5200_v50  ;;  %4686 = vmatprep.subr.bf16.mxu1 %v5549_v17  ;;  %v5256_v50 = vld [vmem:[#allocation7 + $0x2d8] ss:$12 sps:$4 sm:$0xff]  }
 0x290   :  { %2491 = vmatpush1.bf16.msra.mxu0 %v5198_v52  ;;  %4687 = vmatpush3.bf16.msra.mxu1 %v5201_v47  ;;  %v5259_v52 = vld [vmem:[#allocation7 + $0x2ec] ss:$12 sps:$4 sm:$0xff]   ;;  %v5260_v47 = vld [vmem:[#allocation7 + $0x3b0] ss:$12 sps:$4 sm:$0xff]  }
 0x291   :  { %2492 = vmatprep.subr.bf16.mxu0 %v5204_v54  ;;  %4688 = vmatprep.subr.bf16.mxu1 %v5549_v17  ;;  %v5257_v54 = vld [vmem:[#allocation7 + $0x2e8] ss:$12 sps:$4 sm:$0xff]  }
 0x294   :  { %2493 = vmatpush1.bf16.msra.mxu0 %v5202_v55  ;;  %4689 = vmatpush3.bf16.msra.mxu1 %v5205_v56  ;;  %v5261_v55 = vld [vmem:[#allocation7 + $0x2f0] ss:$12 sps:$4 sm:$0xff]  }
 0x295   :  { %2494 = vmatprep.subr.bf16.mxu0 %v5208_v57  ;;  %4690 = vmatprep.subr.bf16.mxu1 %v5549_v17  ;;  %v5264_v56 = vld [vmem:[#allocation7 + $0x304] ss:$12 sps:$4 sm:$0xff]   ;;  %v5262_v57 = vld [vmem:[#allocation7 + $0x300] ss:$12 sps:$4 sm:$0xff]  }
 0x298   :  { %2495 = vmatpush1.bf16.msra.mxu0 %v5206_v58  ;;  %4691 = vmatpush3.bf16.msra.mxu1 %v5209_v59  ;;  %v5265_v58 = vld [vmem:[#allocation7 + $0x3c8] ss:$12 sps:$4 sm:$0xff]  }
 0x299   :  { %2496 = vmatprep.subr.bf16.mxu0 %v5212_v60  ;;  %4692 = vmatprep.subr.bf16.mxu1 %v5549_v17  ;;  %v5268_v59 = vld [vmem:[#allocation7 + $0x31c] ss:$12 sps:$4 sm:$0xff]   ;;  %v5266_v60 = vld [vmem:[#allocation7 + $0x318] ss:$12 sps:$4 sm:$0xff]  }
 0x29c   :  { %2497 = vmatpush1.bf16.msra.mxu0 %v5210_v62  ;;  %4693 = vmatpush3.bf16.msra.mxu1 %v5213_v63  ;;  %v1930_v2 = vpop.f32.mrb[8].mxu1  ;;  %v5272_v62 = vld [vmem:[#allocation7 + $0x334] ss:$12 sps:$4 sm:$0xff]   ;;  %v5270_v63 = vld [vmem:[#allocation7 + $0x330] ss:$12 sps:$4 sm:$0xff]  }
 0x29d   :  { %v1931_v4 = vadd.f32 %v1930_v2, %v1890_v1  ;;  %v4680_v6 = vpop.f32.mrb[9].mxu1  ;;  %2498 = vmatprep.subr.bf16.mxu0 %v5216_v0  ;;  %4694 = vmatprep.subr.bf16.mxu1 %v5549_v17  ;;  %v5273_v0 = vld [vmem:[#allocation7 + $0x3f8] ss:$12 sps:$4 sm:$0xff]   ;;  %v5274_v2 = vld [vmem:[#allocation7 + $0x348] ss:$12 sps:$4 sm:$0xff]  }
 0x29e   :  { %v1933_v15 = vpop.f32.mrb[10].mxu1  ;;  %v5276_v1 = vld [vmem:[#allocation7 + $0x34c] ss:$12 sps:$4 sm:$0xff]   ;;  %v5281_v6 = vld [vmem:[#allocation7 + $0x428] ss:$12 sps:$4 sm:$0xff]  }
 0x29f   :  { %v1934_v16 = vadd.f32 %v1933_v15, %v1893_v7  ;;  %v4681_v18 = vpop.f32.mrb[11].mxu1  ;;  %v1939_v21 = vmax.f32 %v1931_v4, 0.0  ;;  %v5278_v4 = vld [vmem:[#allocation7 + $0x360] ss:$12 sps:$4 sm:$0xff]   ;;  %v5284_v7 = vld [vmem:[#allocation7 + $0x37c] ss:$12 sps:$4 sm:$0xff]  }
 0x2a0   :  { %2499 = vmatpush1.bf16.msra.mxu0 %v5214_v3  ;;  %4695 = vmatpush3.bf16.msra.mxu1 %v5217_v37  ;;  %v5277_v3 = vld [vmem:[#allocation7 + $0x410] ss:$12 sps:$4 sm:$0xff]   ;;  %v5285_v15 = vld [vmem:[#allocation7 + $0x440] ss:$12 sps:$4 sm:$0xff]  }
 0x2a1   :  { %v1942_v22 = vmax.f32 %v1934_v16, 0.0  ;;  %2500 = vmatprep.subr.bf16.mxu0 %v5220_v8  ;;  %4696 = vmatprep.subr.bf16.mxu1 %v5549_v17  ;;  %v5280_v37 = vld [vmem:[#allocation7 + $0x364] ss:$12 sps:$4 sm:$0xff]   ;;  %v5288_v16 = vld [vmem:[#allocation7 + $0x394] ss:$12 sps:$4 sm:$0xff]  }
 0x2a2   :  { %v5282_v8 = vld [vmem:[#allocation7 + $0x378] ss:$12 sps:$4 sm:$0xff]   ;;  %v5286_v18 = vld [vmem:[#allocation7 + $0x390] ss:$12 sps:$4 sm:$0xff]  }
 0x2a3   :  { %v1945_v25 = vpack.c.bf16 %v1942_v22, %v1939_v21  ;;  %v5290_v21 = vld [vmem:[#allocation7 + $0x3a8] ss:$12 sps:$4 sm:$0xff]   ;;  %v5293_v22 = vld [vmem:[#allocation7 + $0x470] ss:$12 sps:$4 sm:$0xff]  }
 0x2a4   :  { %2501 = vmatpush1.bf16.msra.mxu0 %v5218_v19  ;;  %4697 = vmatpush3.bf16.msra.mxu1 %v5221_v20  ;;  %v5289_v19 = vld [vmem:[#allocation7 + $0x458] ss:$12 sps:$4 sm:$0xff]  }
 0x2a5   :  { %3167 = vmatprep.subr.bf16.mxu1 %v5224_v23  ;;  %4600 = vmatprep.subr.bf16.mxu0 %v5225_v24  ;;  %v5292_v20 = vld [vmem:[#allocation7 + $0x3ac] ss:$12 sps:$4 sm:$0xff]   ;;  %v5296_v23 = vld [vmem:[#allocation7 + $0x3c4] ss:$12 sps:$4 sm:$0xff]  }
 0x2a6   :  { %v5294_v24 = vld [vmem:[#allocation7 + $0x3c0] ss:$12 sps:$4 sm:$0xff]  }
 0x2a7   :  { %2519 = vmatmul.mubr.bf16.vlgmr.msra.gmra.mrb[12].mxu0 %v1945_v25  ;;  %4699 = vmatmul.mubr.bf16.vlgmr.msra.gmra.mrb[16].mxu1 %v1945_v25  ;;  %v5299_v25 = vld [vmem:[#allocation7 + $0x3dc] ss:$12 sps:$4 sm:$0xff]  }
 0x2a8   :  { %3168 = vmatpush1.bf16.msra.mxu1 %v5222_v26  ;;  %3199 = vmatprep.mubr.bf16.mxu1 %v5719_v51  ;;  %v5297_v26 = vld [vmem:[#allocation7 + $0x3d8] ss:$12 sps:$4 sm:$0xff]  }
 0x2a9   :  { %4601 = vmatpush3.bf16.msra.mxu0 %v5226_v27  ;;  %3285 = vmatprep.mubr.bf16.mxu0 %v5719_v51  ;;  %v5245_v51 = vld [vmem:[#allocation7 + $0x368] ss:$12 sps:$4 sm:$0xff]  }
 0x2aa   :  { %3169 = vmatprep.subr.bf16.mxu1 %v5229_v28  ;;  %4602 = vmatprep.subr.bf16.mxu0 %v5230_v29  ;;  %v5302_v27 = vld [vmem:[#allocation7 + $0x3f4] ss:$12 sps:$4 sm:$0xff]   ;;  %v5300_v28 = vld [vmem:[#allocation7 + $0x3f0] ss:$12 sps:$4 sm:$0xff]   ;;  %v5305_v29 = vld [vmem:[#allocation7 + $0x40c] ss:$12 sps:$4 sm:$0xff]  }
 0x2ac   :  { %3170 = vmatpush1.bf16.msra.mxu1 %v5227_v30  ;;  %v5303_v30 = vld [vmem:[#allocation7 + $0x408] ss:$12 sps:$4 sm:$0xff]  }
 0x2ad   :  { %4603 = vmatpush3.bf16.msra.mxu0 %v5231_v31  ;;  %3171 = vmatprep.subr.bf16.mxu1 %v5234_v32  ;;  %v5308_v31 = vld [vmem:[#allocation7 + $0x424] ss:$12 sps:$4 sm:$0xff]   ;;  %v5306_v32 = vld [vmem:[#allocation7 + $0x420] ss:$12 sps:$4 sm:$0xff]  }
 0x2ae   :  { %4604 = vmatprep.subr.bf16.mxu0 %v5235_v33  ;;  %v5309_v33 = vld [vmem:[#allocation7 + $0x438] ss:$12 sps:$4 sm:$0xff]  }
 0x2b0   :  { %3172 = vmatpush1.bf16.msra.mxu1 %v5232_v34  ;;  %v5314_v34 = vld [vmem:[#allocation7 + $0x454] ss:$12 sps:$4 sm:$0xff]  }
 0x2b1   :  { %4605 = vmatpush3.bf16.msra.mxu0 %v5236_v35  ;;  %3173 = vmatprep.subr.bf16.mxu1 %v5239_v36  ;;  %v5312_v35 = vld [vmem:[#allocation7 + $0x450] ss:$12 sps:$4 sm:$0xff]   ;;  %v5317_v36 = vld [vmem:[#allocation7 + $0x46c] ss:$12 sps:$4 sm:$0xff]  }
 0x2b2   :  { %4606 = vmatprep.subr.bf16.mxu0 %v5240_v38  ;;  %v5315_v38 = vld [vmem:[#allocation7 + $0x468] ss:$12 sps:$4 sm:$0xff]  }
 0x2b4   :  { %3174 = vmatpush1.bf16.msra.mxu1 %v5237_v39  ;;  %v5318_v39 = vld [vmem:[#allocation8 + $0x240] ss:$12 sps:$4 sm:$0xff]  }
 0x2b5   :  { %4607 = vmatpush3.bf16.msra.mxu0 %v5241_v40  ;;  %3175 = vmatprep.subr.bf16.mxu1 %v5244_v41  ;;  %v5320_v40 = vld [vmem:[#allocation8 + $0x244] ss:$12 sps:$4 sm:$0xff]   ;;  %v5323_v41 = vld [vmem:[#allocation8 + $0x25c] ss:$12 sps:$4 sm:$0xff]  }
 0x2b6   :  { %4608 = vmatprep.subr.bf16.mxu0 %v5245_v51  ;;  %v5321_v51 = vld [vmem:[#allocation8 + $0x258] ss:$12 sps:$4 sm:$0xff]  }
 0x2b8   :  { %3176 = vmatpush1.bf16.msra.mxu1 %v5242_v42  ;;  %v5326_v42 = vld [vmem:[#allocation8 + $0x274] ss:$12 sps:$4 sm:$0xff]  }
 0x2b9   :  { %4609 = vmatpush3.bf16.msra.mxu0 %v5246_v9  ;;  %3177 = vmatprep.subr.bf16.mxu1 %v5249_v43  ;;  %v5324_v9 = vld [vmem:[#allocation8 + $0x270] ss:$12 sps:$4 sm:$0xff]   ;;  %v5329_v43 = vld [vmem:[#allocation8 + $0x28c] ss:$12 sps:$4 sm:$0xff]  }
 0x2ba   :  { %4610 = vmatprep.subr.bf16.mxu0 %v5250_v44  ;;  %v5327_v44 = vld [vmem:[#allocation8 + $0x288] ss:$12 sps:$4 sm:$0xff]  }
 0x2bc   :  { %3178 = vmatpush1.bf16.msra.mxu1 %v5247_v13  ;;  %v5332_v13 = vld [vmem:[#allocation8 + $0x2a4] ss:$12 sps:$4 sm:$0xff]  }
 0x2bd   :  { %4611 = vmatpush3.bf16.msra.mxu0 %v5251_v45  ;;  %3179 = vmatprep.subr.bf16.mxu1 %v5254_v46  ;;  %v5330_v45 = vld [vmem:[#allocation8 + $0x2a0] ss:$12 sps:$4 sm:$0xff]   ;;  %v5333_v46 = vld [vmem:[#allocation8 + $0x2b8] ss:$12 sps:$4 sm:$0xff]  }
 0x2be   :  { %4612 = vmatprep.subr.bf16.mxu0 %v5255_v5  ;;  %v5338_v5 = vld [vmem:[#allocation8 + $0x2d4] ss:$12 sps:$4 sm:$0xff]  }
 0x2c0   :  { %3180 = vmatpush1.bf16.msra.mxu1 %v5252_v49  ;;  %v5336_v49 = vld [vmem:[#allocation8 + $0x2d0] ss:$12 sps:$4 sm:$0xff]  }
 0x2c1   :  { %4613 = vmatpush3.bf16.msra.mxu0 %v5256_v50  ;;  %3181 = vmatprep.subr.bf16.mxu1 %v5259_v52  ;;  %v5341_v50 = vld [vmem:[#allocation8 + $0x2ec] ss:$12 sps:$4 sm:$0xff]   ;;  %v5339_v52 = vld [vmem:[#allocation8 + $0x2e8] ss:$12 sps:$4 sm:$0xff]  }
 0x2c2   :  { %4614 = vmatprep.subr.bf16.mxu0 %v5260_v47  ;;  %v5342_v47 = vld [vmem:[#allocation8 + $0x300] ss:$12 sps:$4 sm:$0xff]  }
 0x2c4   :  { %3182 = vmatpush1.bf16.msra.mxu1 %v5257_v54  ;;  %v5344_v54 = vld [vmem:[#allocation8 + $0x304] ss:$12 sps:$4 sm:$0xff]  }
 0x2c5   :  { %4615 = vmatpush3.bf16.msra.mxu0 %v5261_v55  ;;  %3183 = vmatprep.subr.bf16.mxu1 %v5264_v56  ;;  %v5345_v55 = vld [vmem:[#allocation8 + $0x308] ss:$12 sps:$4 sm:$0xff]  }
 0x2c6   :  { %4702 = vmatprep.subr.bf16.mxu0 %v5549_v17  ;;  %v5346_v56 = vld [vmem:[#allocation8 + $0x248] ss:$12 sps:$4 sm:$0xff]  }
 0x2c8   :  { %3286 = vmatmul.mubr.bf16.vlgmr.msra.gmra.mrb[16].mxu0 %v5700_v48  ;;  %3184 = vmatpush1.bf16.msra.mxu1 %v5262_v57  ;;  %v5349_v57 = vld [vmem:[#allocation8 + $0x31c] ss:$12 sps:$4 sm:$0xff]  }
 0x2c9   :  { %4703 = vmatpush3.bf16.msra.mxu0 %v5265_v58  ;;  %3185 = vmatprep.subr.bf16.mxu1 %v5268_v59  ;;  %v5350_v58 = vld [vmem:[#allocation8 + $0x320] ss:$12 sps:$4 sm:$0xff]  }
 0x2ca   :  { %4704 = vmatprep.subr.bf16.mxu0 %v5549_v17  ;;  %4718 = vmatprep.mubr.msk.bf16.mxu0 %vm5550_vm0, %v5549_v17  ;;  %v5351_v59 = vld [vmem:[#allocation8 + $0x260] ss:$12 sps:$4 sm:$0xff]  }
 0x2cc   :  { %3186 = vmatpush1.bf16.msra.mxu1 %v5266_v60  ;;  %v5347_v60 = vld [vmem:[#allocation8 + $0x318] ss:$12 sps:$4 sm:$0xff]  }
 0x2cd   :  { %4705 = vmatpush3.bf16.msra.mxu0 %v5269_v61  ;;  %3187 = vmatprep.subr.bf16.mxu1 %v5272_v62  ;;  %v5355_v61 = vld [vmem:[#allocation8 + $0x338] ss:$12 sps:$4 sm:$0xff]   ;;  %v5354_v62 = vld [vmem:[#allocation8 + $0x334] ss:$12 sps:$4 sm:$0xff]  }
 0x2ce   :  { %4706 = vmatprep.subr.bf16.mxu0 %v5549_v17 }
 0x2d0   :  { %3188 = vmatpush1.bf16.msra.mxu1 %v5270_v63  ;;  %v5356_v63 = vld [vmem:[#allocation8 + $0x278] ss:$12 sps:$4 sm:$0xff]  }
 0x2d1   :  { %4707 = vmatpush3.bf16.msra.mxu0 %v5273_v0  ;;  %3189 = vmatprep.subr.bf16.mxu1 %v5276_v1  ;;  %v5352_v0 = vld [vmem:[#allocation8 + $0x330] ss:$12 sps:$4 sm:$0xff]  }
 0x2d2   :  { %4708 = vmatprep.subr.bf16.mxu0 %v5549_v17  ;;  %v5360_v1 = vld [vmem:[#allocation8 + $0x350] ss:$12 sps:$4 sm:$0xff]  }
 0x2d4   :  { %3190 = vmatpush1.bf16.msra.mxu1 %v5274_v2  ;;  %v5359_v2 = vld [vmem:[#allocation8 + $0x34c] ss:$12 sps:$4 sm:$0xff]  }
 0x2d5   :  { %4709 = vmatpush3.bf16.msra.mxu0 %v5277_v3  ;;  %3191 = vmatprep.subr.bf16.mxu1 %v5280_v37  ;;  %v5361_v3 = vld [vmem:[#allocation8 + $0x290] ss:$12 sps:$4 sm:$0xff]   ;;  %v5357_v37 = vld [vmem:[#allocation8 + $0x348] ss:$12 sps:$4 sm:$0xff]  }
 0x2d6   :  { %4710 = vmatprep.subr.bf16.mxu0 %v5549_v17 }
 0x2d8   :  { %3192 = vmatpush1.bf16.msra.mxu1 %v5278_v4  ;;  %v5365_v4 = vld [vmem:[#allocation8 + $0x368] ss:$12 sps:$4 sm:$0xff]  }
 0x2d9   :  { %4711 = vmatpush3.bf16.msra.mxu0 %v5281_v6  ;;  %3193 = vmatprep.subr.bf16.mxu1 %v5284_v7  ;;  %v5364_v6 = vld [vmem:[#allocation8 + $0x364] ss:$12 sps:$4 sm:$0xff]   ;;  %v5366_v7 = vld [vmem:[#allocation8 + $0x2a8] ss:$12 sps:$4 sm:$0xff]  }
 0x2da   :  { %4712 = vmatprep.subr.bf16.mxu0 %v5549_v17 }
 0x2dc   :  { %3194 = vmatpush1.bf16.msra.mxu1 %v5282_v8  ;;  %v5362_v8 = vld [vmem:[#allocation8 + $0x360] ss:$12 sps:$4 sm:$0xff]  }
 0x2dd   :  { %4713 = vmatpush3.bf16.msra.mxu0 %v5285_v15  ;;  %3195 = vmatprep.subr.bf16.mxu1 %v5288_v16  ;;  %v5370_v15 = vld [vmem:[#allocation8 + $0x380] ss:$12 sps:$4 sm:$0xff]   ;;  %v5369_v16 = vld [vmem:[#allocation8 + $0x37c] ss:$12 sps:$4 sm:$0xff]  }
 0x2de   :  { %4714 = vmatprep.subr.bf16.mxu0 %v5549_v17 }
 0x2e0   :  { %3196 = vmatpush1.bf16.msra.mxu1 %v5286_v18  ;;  %v5371_v18 = vld [vmem:[#allocation8 + $0x2c0] ss:$12 sps:$4 sm:$0xff]  }
 0x2e1   :  { %4715 = vmatpush3.bf16.msra.mxu0 %v5289_v19  ;;  %3197 = vmatprep.subr.bf16.mxu1 %v5292_v20  ;;  %v5367_v19 = vld [vmem:[#allocation8 + $0x378] ss:$12 sps:$4 sm:$0xff]  }
 0x2e2   :  { %4716 = vmatprep.subr.bf16.mxu0 %v5549_v17 }
 0x2e4   :  { %3198 = vmatpush1.bf16.msra.mxu1 %v5290_v21 }
 0x2e5   :  { %4717 = vmatpush3.bf16.msra.mxu0 %v5293_v22  ;;  %3210 = vmatprep.subr.bf16.mxu1 %v5296_v23  ;;  %v5374_v22 = vld [vmem:[#allocation8 + $0x394] ss:$12 sps:$4 sm:$0xff]   ;;  %v5375_v23 = vld [vmem:[#allocation8 + $0x398] ss:$12 sps:$4 sm:$0xff]  }
 0x2e6   :  { %3843 = vmatprep.subr.bf16.mxu0 %v5320_v40 }
 0x2e7   :  { %3200 = vmatmul.mubr.bf16.vlgmr.msra.gmra.mrb[20].mxu1 %v5700_v48  ;;  %v5311_v48 = vld [vmem:[#allocation7 + $0x43c] ss:$12 sps:$4 sm:$0xff]  }
 0x2e8   :  { %4719 = vmatmul.mubr.bf16.vlgmr.msra.gmra.mrb[20].mxu0 %v5721_v53  ;;  %3211 = vmatpush1.bf16.msra.mxu1 %v5294_v24 }
 0x2e9   :  { %3212 = vmatprep.subr.bf16.mxu1 %v5299_v25  ;;  %3242 = vmatprep.mubr.bf16.mxu1 %v5548_v12 }
 0x2ea   :  { %3844 = vmatpush1.bf16.msra.mxu0 %v5318_v39 }
 0x2eb   :  { %3845 = vmatprep.subr.bf16.mxu0 %v5323_v41 }
 0x2ec   :  { %3213 = vmatpush1.bf16.msra.mxu1 %v5297_v26  ;;  %v5372_v26 = vld [vmem:[#allocation8 + $0x390] ss:$12 sps:$4 sm:$0xff]  }
 0x2ed   :  { %3214 = vmatprep.subr.bf16.mxu1 %v5302_v27  ;;  %v5376_v27 = vld [vmem:[#allocation8 + $0x2d8] ss:$12 sps:$4 sm:$0xff]  }
 0x2ee   :  { %3846 = vmatpush1.bf16.msra.mxu0 %v5321_v51 }
 0x2ef   :  { %3847 = vmatprep.subr.bf16.mxu0 %v5326_v42 }
 0x2f0   :  { %3215 = vmatpush1.bf16.msra.mxu1 %v5300_v28 }
 0x2f1   :  { %3216 = vmatprep.subr.bf16.mxu1 %v5305_v29 }
 0x2f2   :  { %3848 = vmatpush1.bf16.msra.mxu0 %v5324_v9 }
 0x2f3   :  { %3849 = vmatprep.subr.bf16.mxu0 %v5329_v43 }
 0x2f4   :  { %3217 = vmatpush1.bf16.msra.mxu1 %v5303_v30  ;;  %v5379_v30 = vld [vmem:[#allocation8 + $0x3ac] ss:$12 sps:$4 sm:$0xff]  }
 0x2f5   :  { %3218 = vmatprep.subr.bf16.mxu1 %v5308_v31  ;;  %v5380_v31 = vld [vmem:[#allocation8 + $0x3b0] ss:$12 sps:$4 sm:$0xff]  }
 0x2f6   :  { %3850 = vmatpush1.bf16.msra.mxu0 %v5327_v44 }
 0x2f7   :  { %3851 = vmatprep.subr.bf16.mxu0 %v5332_v13 }
 0x2f8   :  { %3219 = vmatpush1.bf16.msra.mxu1 %v5306_v32  ;;  %v5377_v32 = vld [vmem:[#allocation8 + $0x3a8] ss:$12 sps:$4 sm:$0xff]  }
 0x2f9   :  { %3220 = vmatprep.subr.bf16.mxu1 %v5311_v48  ;;  %v5381_v48 = vld [vmem:[#allocation8 + $0x2f0] ss:$12 sps:$4 sm:$0xff]  }
 0x2fa   :  { %3852 = vmatpush1.bf16.msra.mxu0 %v5330_v45 }
 0x2fc   :  { %3221 = vmatpush1.bf16.msra.mxu1 %v5309_v33  ;;  %v5384_v33 = vld [vmem:[#allocation8 + $0x3c4] ss:$12 sps:$4 sm:$0xff]  }
 0x2fd   :  { %3222 = vmatprep.subr.bf16.mxu1 %v5314_v34  ;;  %v2042_v34 = vld [vmem:[%s5847_s6] sm:$0x7] }
 0x300   :  { %3223 = vmatpush1.bf16.msra.mxu1 %v5312_v35  ;;  %v2055_v35 = vrot.slane %v2042_v34, %v5680_v11 }
 0x301   :  { %3224 = vmatprep.subr.bf16.mxu1 %v5317_v36  ;;  %v2047_v36 = vrot.slane %v2042_v34, %v5677_v10 }
 0x304   :  { %3225 = vmatpush1.bf16.msra.mxu1 %v5315_v38  ;;  %v2051_v38 = vrot.slane %v2042_v34, %v5688_v14 }
 0x305   :  { %4631 = vmatprep.subr.bf16.mxu1 %v5345_v55 }
 0x307   :  { %3243 = vmatmul.mubr.bf16.vlgmr.msra.gmra.mrb[20].mxu1 %v5721_v53  ;;  %v5335_v53 = vld [vmem:[#allocation8 + $0x2bc] ss:$12 sps:$4 sm:$0xff]  }
 0x308   :  { %3853 = vmatprep.subr.bf16.mxu0 %v5335_v53  ;;  %4632 = vmatpush3.bf16.msra.mxu1 %v5346_v56 }
 0x309   :  { %3854 = vmatpush1.bf16.msra.mxu0 %v5333_v46  ;;  %4633 = vmatprep.subr.bf16.mxu1 %v5350_v58 }
 0x30a   :  { %3855 = vmatprep.subr.bf16.mxu0 %v5338_v5 }
 0x30c   :  { %4634 = vmatpush3.bf16.msra.mxu1 %v5351_v59 }
 0x30d   :  { %3856 = vmatpush1.bf16.msra.mxu0 %v5336_v49  ;;  %4635 = vmatprep.subr.bf16.mxu1 %v5355_v61 }
 0x30e   :  { %3857 = vmatprep.subr.bf16.mxu0 %v5341_v50 }
 0x310   :  { %4636 = vmatpush3.bf16.msra.mxu1 %v5356_v63 }
 0x311   :  { %3858 = vmatpush1.bf16.msra.mxu0 %v5339_v52  ;;  %4637 = vmatprep.subr.bf16.mxu1 %v5360_v1 }
 0x312   :  { %3859 = vmatprep.subr.bf16.mxu0 %v5344_v54 }
 0x314   :  { %4638 = vmatpush3.bf16.msra.mxu1 %v5361_v3 }
 0x315   :  { %3860 = vmatpush1.bf16.msra.mxu0 %v5342_v47  ;;  %4639 = vmatprep.subr.bf16.mxu1 %v5365_v4 }
 0x316   :  { %3861 = vmatprep.subr.bf16.mxu0 %v5349_v57 }
 0x318   :  { %4640 = vmatpush3.bf16.msra.mxu1 %v5366_v7 }
 0x319   :  { %3862 = vmatpush1.bf16.msra.mxu0 %v5347_v60  ;;  %4641 = vmatprep.subr.bf16.mxu1 %v5370_v15 }
 0x31a   :  { %3863 = vmatprep.subr.bf16.mxu0 %v5354_v62 }
 0x31c   :  { %4642 = vmatpush3.bf16.msra.mxu1 %v5371_v18  ;;  %v4380_v18 = vld [vmem:[%s5845_s4 + $0x3] sm:$0x7] }
 0x31d   :  { %3864 = vmatpush1.bf16.msra.mxu0 %v5352_v0  ;;  %4643 = vmatprep.subr.bf16.mxu1 %v5375_v23 }
 0x31e   :  { %3865 = vmatprep.subr.bf16.mxu0 %v5359_v2 }
 0x320   :  { %4644 = vmatpush3.bf16.msra.mxu1 %v5376_v27 }
 0x321   :  { %3866 = vmatpush1.bf16.msra.mxu0 %v5357_v37  ;;  %4645 = vmatprep.subr.bf16.mxu1 %v5380_v31  ;;  %v2771_v31 = vrot.slane %v4380_v18, %v5677_v10 }
 0x322   :  { %3867 = vmatprep.subr.bf16.mxu0 %v5364_v6 }
 0x324   :  { %4646 = vmatpush3.bf16.msra.mxu1 %v5381_v48 }
 0x325   :  { %3868 = vmatpush1.bf16.msra.mxu0 %v5362_v8  ;;  %4722 = vmatprep.subr.bf16.mxu1 %v5549_v17 }
 0x326   :  { %3869 = vmatprep.subr.bf16.mxu0 %v5369_v16 }
 0x329   :  { %3870 = vmatpush1.bf16.msra.mxu0 %v5367_v19  ;;  %v2779_v19 = vrot.slane %v4380_v18, %v5680_v11 }
 0x32a   :  { %3871 = vmatprep.subr.bf16.mxu0 %v5374_v22 }
 0x32d   :  { %3872 = vmatpush1.bf16.msra.mxu0 %v5372_v26 }
 0x32e   :  { %3873 = vmatprep.subr.bf16.mxu0 %v5379_v30 }
 0x331   :  { %3874 = vmatpush1.bf16.msra.mxu0 %v5377_v32  ;;  %v2775_v32 = vrot.slane %v4380_v18, %v5688_v14 }
 0x332   :  { %3886 = vmatprep.subr.bf16.mxu0 %v5384_v33 }
 0x35a   :  { %v4585_v20 = vpop.f32.mrb[12].mxu1 }
 0x35b   :  { %v4586_v21 = vpop.f32.mrb[13].mxu1 }
 0x35c   :  { %v4587_v24 = vadd.f32 %v4586_v21, %v4585_v20  ;;  %v4588_v25 = vpop.f32.mrb[14].mxu1 }
 0x35d   :  { %v4589_v28 = vpop.f32.mrb[15].mxu1 }
 0x35e   :  { %v4590_v29 = vadd.f32 %v4589_v28, %v4588_v25  ;;  %v2564_v39 = vadd.f32 %v4587_v24, %v2055_v35 }
 0x360   :  { %v2567_v44 = vadd.f32 %v4590_v29, %v2055_v35 }
 0x37a   :  { %v2520_v40 = vpop.f32.mrb[12].mxu0  ;;  %v2604_v41 = vpop.f32.mrb[16].mxu1 }
 0x37b   :  { %v4758_v51 = vadd.f32 %v2520_v40, %v2047_v36  ;;  %v2605_v42 = vadd.f32 %v2604_v41, %v2564_v39  ;;  %v2522_v9 = vpop.f32.mrb[13].mxu0  ;;  %v4700_v43 = vpop.f32.mrb[17].mxu1 }
 0x37c   :  { %v4759_v13 = vadd.f32 %v2522_v9, %v2051_v38  ;;  %v2524_v45 = vpop.f32.mrb[14].mxu0  ;;  %v2607_v53 = vpop.f32.mrb[18].mxu1 }
 0x37d   :  { %v5770_v46 = vmax.f32 %v4758_v51, 0.0  ;;  %v4760_v5 = vadd.f32 %v2524_v45, %v2047_v36  ;;  %v2608_v49 = vadd.f32 %v2607_v53, %v2567_v44  ;;  %v2526_v50 = vpop.f32.mrb[15].mxu0  ;;  %v4701_v52 = vpop.f32.mrb[19].mxu1  ;;  %v5772_v47 = vmax.f32 %v2605_v42, 0.0  ;;  %v5385_v45 = vld [vmem:[#allocation8 + $0x3c8] ss:$12 sps:$4 sm:$0xff]  }
 0x37e   :  { %v5774_v54 = vmax.f32 %v4759_v13, 0.0  ;;  %v4761_v55 = vadd.f32 %v2526_v50, %v2051_v38  ;;  %v5382_v13 = vld [vmem:[#allocation8 + $0x3c0] ss:$12 sps:$4 sm:$0xff]   ;;  %v5388_v53 = vld [vmem:[#allocation8 + $0x3dc] ss:$12 sps:$4 sm:$0xff]  }
 0x37f   :  { %v2617_v56 = vmul.f32 %v5770_v46, %v5770_v46  ;;  %v5778_v57 = vmax.f32 %v4760_v5, 0.0  ;;  %v5786_v61 = vmax.f32 %v2608_v49, 0.0  ;;  %v2619_v63 = vmul.f32 %v5772_v47, %v5772_v47  ;;  %v5386_v5 = vld [vmem:[#allocation8 + $0x3d8] ss:$12 sps:$4 sm:$0xff]   ;;  %v5389_v49 = vld [vmem:[#allocation8 + $0x3e0] ss:$12 sps:$4 sm:$0xff]  }
 0x380   :  { %v2618_v58 = vmul.f32 %v5774_v54, %v5774_v54  ;;  %v5782_v59 = vmax.f32 %v4761_v55, 0.0  ;;  %v5392_v50 = vld [vmem:[#allocation8 + $0x3f4] ss:$12 sps:$4 sm:$0xff]   ;;  %v5390_v52 = vld [vmem:[#allocation8 + $0x3f0] ss:$12 sps:$4 sm:$0xff]  }
 0x381   :  { %v2620_v60 = vmul.f32 %v5778_v57, %v5778_v57  ;;  %v2622_v3 = vmul.f32 %v5786_v61, %v5786_v61  ;;  %v5393_v55 = vld [vmem:[#allocation8 + $0x3f8] ss:$12 sps:$4 sm:$0xff]  }
 0x382   :  { %v2621_v62 = vmul.f32 %v5782_v59, %v5782_v59  ;;  %v2623_v0 = vadd.f32 %v2618_v58, %v2617_v56  ;;  %v5396_v56 = vld [vmem:[#allocation8 + $0x40c] ss:$12 sps:$4 sm:$0xff]   ;;  %v5394_v58 = vld [vmem:[#allocation8 + $0x408] ss:$12 sps:$4 sm:$0xff]  }
 0x384   :  { %v2624_v1 = vadd.f32 %v2623_v0, %v2619_v63  ;;  %v2627_v2 = vadd.f32 %v2621_v62, %v2620_v60  ;;  %v5397_v60 = vld [vmem:[#allocation8 + $0x410] ss:$12 sps:$4 sm:$0xff]   ;;  %v5401_v63 = vld [vmem:[#allocation8 + $0x428] ss:$12 sps:$4 sm:$0xff]  }
 0x385   :  { %v5400_v62 = vld [vmem:[#allocation8 + $0x424] ss:$12 sps:$4 sm:$0xff]   ;;  %v5404_v0 = vld [vmem:[#allocation8 + $0x43c] ss:$12 sps:$4 sm:$0xff]  }
 0x386   :  { %2625 = vadd.xlane.f32.xlu0 %v2624_v1  ;;  %v2628_v37 = vadd.f32 %v2627_v2, %v2622_v3  ;;  %v5402_v1 = vld [vmem:[#allocation8 + $0x438] ss:$12 sps:$4 sm:$0xff]   ;;  %v5405_v2 = vld [vmem:[#allocation8 + $0x440] ss:$12 sps:$4 sm:$0xff]  }
 0x387   :  { %v5408_v3 = vld [vmem:[#allocation8 + $0x454] ss:$12 sps:$4 sm:$0xff]  }
 0x38a   :  { %2629 = vadd.xlane.f32.xlu0 %v2628_v37  ;;  %v5406_v37 = vld [vmem:[#allocation8 + $0x450] ss:$12 sps:$4 sm:$0xff]  }
 0x39b   :  { %v4616_v4 = vpop.f32.mrb[16].mxu0 }
 0x39c   :  { %v4617_v6 = vpop.f32.mrb[17].mxu0 }
 0x39d   :  { %v4618_v7 = vadd.f32 %v4617_v6, %v4616_v4  ;;  %v4619_v8 = vpop.f32.mrb[18].mxu0  ;;  %v5409_v4 = vld [vmem:[#allocation8 + $0x458] ss:$12 sps:$4 sm:$0xff]  }
 0x39e   :  { %v4620_v15 = vpop.f32.mrb[19].mxu0  ;;  %v5412_v6 = vld [vmem:[#allocation8 + $0x46c] ss:$12 sps:$4 sm:$0xff]  }
 0x39f   :  { %v4621_v16 = vadd.f32 %v4620_v15, %v4619_v8  ;;  %v3288_v20 = vadd.f32 %v4618_v7, %v2779_v19  ;;  %v5410_v7 = vld [vmem:[#allocation8 + $0x468] ss:$12 sps:$4 sm:$0xff]   ;;  %v5413_v8 = vld [vmem:[#allocation8 + $0x470] ss:$12 sps:$4 sm:$0xff]  }
 0x3a1   :  { %v3291_v24 = vadd.f32 %v4621_v16, %v2779_v19 }
 0x3bb   :  { %v3328_v21 = vpop.f32.mrb[20].mxu0 }
 0x3bc   :  { %v3329_v22 = vadd.f32 %v3328_v21, %v3288_v20  ;;  %v4720_v23 = vpop.f32.mrb[21].mxu0 }
 0x3bd   :  { %v3331_v25 = vpop.f32.mrb[22].mxu0 }
 0x3be   :  { %v3332_v26 = vadd.f32 %v3331_v25, %v3291_v24  ;;  %v4721_v27 = vpop.f32.mrb[23].mxu0  ;;  %v3337_v28 = vmax.f32 %v3329_v22, 0.0 }
 0x3c0   :  { %v3340_v29 = vmax.f32 %v3332_v26, 0.0 }
 0x3c2   :  { %v5798_v30 = vpack.c.bf16 %v3340_v29, %v3337_v28 }
 0x3da   :  { %v3244_v48 = vpop.f32.mrb[20].mxu1 }
 0x3db   :  { %v4762_v33 = vadd.f32 %v3244_v48, %v2771_v31  ;;  %v3246_v34 = vpop.f32.mrb[21].mxu1 }
 0x3dc   :  { %v4763_v35 = vadd.f32 %v3246_v34, %v2775_v32  ;;  %v3248_v36 = vpop.f32.mrb[22].mxu1 }
 0x3dd   :  { %v4764_v38 = vadd.f32 %v3248_v36, %v2771_v31  ;;  %v3250_v39 = vpop.f32.mrb[23].mxu1  ;;  %v3335_v41 = vmax.f32 %v4762_v33, 0.0  ;;  %v4453_v33 = vld [vmem:[%s5847_s6 + $0x3] sm:$0x7]  ;;  %s5551_s6 = smov [#allocation10]  }
 0x3de   :  { %v4765_v40 = vadd.f32 %v3250_v39, %v2775_v32  ;;  %v3336_v42 = vmax.f32 %v4763_v35, 0.0  ;;  %s4071_s12 = sshll.u32 %s5551_s6, 4  ;;  %s4072_s12 = int_to_ptr.vmem [resolvable:$true] %s4071_s12 }
 0x3df   :  { %v3338_v51 = vmax.f32 %v4764_v38, 0.0  ;;  %s5510_s13 = scalar_lea.vmem %s4072_s12, 768  ;;  %p5515_p5 = scmp.lt.s32.totalorder %s4072_s12, %s4072_s12 }
 0x3e0   :  { %v3339_v9 = vmax.f32 %v4765_v40, 0.0  ;;  %p5511_p4 = scmp.ne.s32.totalorder %s4072_s12, %s5510_s13  ;;  %p5516_p6 = scmp.lt.s32.totalorder %s5510_s13, %s5510_s13 }
 0x3e1   :  { %v3341_v43 = vpack.c.bf16 %v3338_v51, %v3335_v41 }
 0x3e2   :  { %v3342_v44 = vpack.c.bf16 %v3339_v9, %v3336_v42  ;;  %p5517_p7 = por %p5516_p6, %p5515_p5 }
 0x3e4   :  { %3875 = vmatprep.mubr.bf16.mxu0 %v3342_v44  ;;  %3961 = vmatprep.mubr.bf16.mxu1 %v3342_v44  ;;  %p5518_p8 = pnand %p5517_p7, %p5511_p4 }
 0x3e5   :  { %3876 = vmatmul.mubr.bf16.vlgmr.msra.gmra.mrb[24].mxu0 %v3341_v43  ;;  %3962 = vmatmul.mubr.bf16.vlgmr.msra.gmra.mrb[24].mxu1 %v3341_v43 }
 0x3e6   :  { %3887 = vmatpush1.bf16.msra.mxu0 %v5382_v13  ;;  %4723 = vmatpush3.bf16.msra.mxu1 %v5385_v45 }
 0x3e7   :  { %3888 = vmatprep.subr.bf16.mxu0 %v5388_v53  ;;  %4724 = vmatprep.subr.bf16.mxu1 %v5549_v17 }
 0x3e8   :  { %3918 = vmatprep.mubr.bf16.mxu0 %v5548_v12  ;;  %4738 = vmatprep.mubr.msk.bf16.mxu1 %vm5550_vm0, %v5549_v17  ;;  %v5398_v12 = vld [vmem:[#allocation8 + $0x420] ss:$12 sps:$4 sm:$0xff]  }
 0x3ea   :  { %3889 = vmatpush1.bf16.msra.mxu0 %v5386_v5  ;;  %4725 = vmatpush3.bf16.msra.mxu1 %v5389_v49 }
 0x3eb   :  { %3890 = vmatprep.subr.bf16.mxu0 %v5392_v50  ;;  %4726 = vmatprep.subr.bf16.mxu1 %v5549_v17 }
 0x3ee   :  { %3891 = vmatpush1.bf16.msra.mxu0 %v5390_v52  ;;  %4727 = vmatpush3.bf16.msra.mxu1 %v5393_v55 }
 0x3ef   :  { %3892 = vmatprep.subr.bf16.mxu0 %v5396_v56  ;;  %4728 = vmatprep.subr.bf16.mxu1 %v5549_v17 }
 0x3f2   :  { %3893 = vmatpush1.bf16.msra.mxu0 %v5394_v58  ;;  %4729 = vmatpush3.bf16.msra.mxu1 %v5397_v60 }
 0x3f3   :  { %3894 = vmatprep.subr.bf16.mxu0 %v5400_v62  ;;  %4730 = vmatprep.subr.bf16.mxu1 %v5549_v17 }
 0x3f6   :  { %3895 = vmatpush1.bf16.msra.mxu0 %v5398_v12  ;;  %4731 = vmatpush3.bf16.msra.mxu1 %v5401_v63 }
 0x3f7   :  { %3896 = vmatprep.subr.bf16.mxu0 %v5404_v0  ;;  %4732 = vmatprep.subr.bf16.mxu1 %v5549_v17 }
 0x3fa   :  { %3897 = vmatpush1.bf16.msra.mxu0 %v5402_v1  ;;  %4733 = vmatpush3.bf16.msra.mxu1 %v5405_v2 }
 0x3fb   :  { %3898 = vmatprep.subr.bf16.mxu0 %v5408_v3  ;;  %4734 = vmatprep.subr.bf16.mxu1 %v5549_v17 }
 0x3fe   :  { %3899 = vmatpush1.bf16.msra.mxu0 %v5406_v37  ;;  %4735 = vmatpush3.bf16.msra.mxu1 %v5409_v4 }
 0x3ff   :  { %3900 = vmatprep.subr.bf16.mxu0 %v5412_v6  ;;  %4736 = vmatprep.subr.bf16.mxu1 %v5549_v17 }
 0x402   :  { %3901 = vmatpush1.bf16.msra.mxu0 %v5410_v7  ;;  %4737 = vmatpush3.bf16.msra.mxu1 %v5413_v8 }
 0x405   :  { %3919 = vmatmul.mubr.bf16.vlgmr.msra.gmra.mrb[24].mxu0 %v5798_v30  ;;  %4739 = vmatmul.mubr.bf16.vlgmr.msra.gmra.mrb[28].mxu1 %v5798_v30 }
 0x413   :  { %v2626_v15 = vpop.xlane.xlu0 %2625 }
 0x414   :  { %v2631_v16 = vmax.f32 %v2626_v15, 1e-24 }
 0x416   :  { %5414 = vrsqrt.f32 %v2631_v16 }
 0x417   :  { %v2630_v18 = vpop.xlane.xlu0 %2629 }
 0x418   :  { %v2632_v19 = vmax.f32 %v2630_v18, 1e-24 }
 0x41a   :  { %5416 = vrsqrt.f32 %v2632_v19 }
 0x420   :  { %v5415_v20 = vpop.eup %5414 }
 0x421   :  { %v2635_v21 = vmul.f32 %v5415_v20, %v5770_v46  ;;  %v2636_v22 = vmul.f32 %v5415_v20, %v5774_v54  ;;  %v2637_v23 = vmul.f32 %v5415_v20, %v5772_v47 }
 0x423   :  { %v4531_v17 = vpack.c.bf16 %v2637_v23, %v2637_v23  ;;  %v4530_v24 = vpack.c.bf16 %v2636_v22, %v2635_v21 }
 0x424   :  { %v5417_v25 = vpop.eup %5416 }
 0x425   :  { %2662 = vst [vmem:[#allocation10 + $0x8] sm:$0xf] %v4531_v17  ;;  %v2638_v26 = vmul.f32 %v5417_v25, %v5778_v57  ;;  %v2639_v27 = vmul.f32 %v5417_v25, %v5782_v59  ;;  %v2640_v28 = vmul.f32 %v5417_v25, %v5786_v61  ;;  %2661 = vst [vmem:[#allocation10] sm:$0xff] %v4530_v24 }
 0x426   :  { %v3455_v57 = vrot.slane %v4453_v33, %v5680_v11  ;;  %v3447_v59 = vrot.slane %v4453_v33, %v5677_v10  ;;  %v3451_v61 = vrot.slane %v4453_v33, %v5688_v14 }
 0x427   :  { %v4533_v29 = vpack.c.bf16 %v2640_v28, %v2640_v28  ;;  %v4532_v30 = vpack.c.bf16 %v2639_v27, %v2638_v26 }
 0x429   :  { %2664 = vst [vmem:[#allocation10 + $0x14] sm:$0xf] %v4533_v29  ;;  %2663 = vst [vmem:[#allocation10 + $0xc] sm:$0xff] %v4532_v30 }
 0x4b8   :  { %v4647_v46 = vpop.f32.mrb[24].mxu1 }
 0x4b9   :  { %v4648_v31 = vpop.f32.mrb[25].mxu1 }
 0x4ba   :  { %v4649_v54 = vadd.f32 %v4648_v31, %v4647_v46  ;;  %v4650_v32 = vpop.f32.mrb[26].mxu1 }
 0x4bb   :  { %v4651_v47 = vpop.f32.mrb[27].mxu1 }
 0x4bc   :  { %v4652_v48 = vadd.f32 %v4651_v47, %v4650_v32  ;;  %v3964_v34 = vadd.f32 %v4649_v54, %v3455_v57 }
 0x4be   :  { %v3967_v51 = vadd.f32 %v4652_v48, %v3455_v57 }
 0x4d8   :  { %v3920_v35 = vpop.f32.mrb[24].mxu0  ;;  %v4004_v36 = vpop.f32.mrb[28].mxu1 }
 0x4d9   :  { %v4766_v38 = vadd.f32 %v3920_v35, %v3447_v59  ;;  %v4005_v39 = vadd.f32 %v4004_v36, %v3964_v34  ;;  %v3922_v40 = vpop.f32.mrb[25].mxu0  ;;  %v4740_v41 = vpop.f32.mrb[29].mxu1 }
 0x4da   :  { %v4767_v42 = vadd.f32 %v3922_v40, %v3451_v61  ;;  %v3924_v9 = vpop.f32.mrb[26].mxu0  ;;  %v4007_v43 = vpop.f32.mrb[30].mxu1 }
 0x4db   :  { %v4011_v44 = vmax.f32 %v4766_v38, 0.0  ;;  %v4768_v13 = vadd.f32 %v3924_v9, %v3447_v59  ;;  %v4008_v45 = vadd.f32 %v4007_v43, %v3967_v51  ;;  %v3926_v53 = vpop.f32.mrb[27].mxu0  ;;  %v4741_v11 = vpop.f32.mrb[31].mxu1  ;;  %v4013_v5 = vmax.f32 %v4005_v39, 0.0 }
 0x4dc   :  { %v4012_v10 = vmax.f32 %v4767_v42, 0.0  ;;  %v4769_v49 = vadd.f32 %v3926_v53, %v3451_v61 }
 0x4dd   :  { %v4017_v14 = vmul.f32 %v4011_v44, %v4011_v44  ;;  %v4014_v50 = vmax.f32 %v4768_v13, 0.0  ;;  %v4016_v58 = vmax.f32 %v4008_v45, 0.0  ;;  %v4019_v62 = vmul.f32 %v4013_v5, %v4013_v5 }
 0x4de   :  { %v4018_v52 = vmul.f32 %v4012_v10, %v4012_v10  ;;  %v4015_v55 = vmax.f32 %v4769_v49, 0.0 }
 0x4df   :  { %v4020_v56 = vmul.f32 %v4014_v50, %v4014_v50  ;;  %v4022_v1 = vmul.f32 %v4016_v58, %v4016_v58 }
 0x4e0   :  { %v4021_v60 = vmul.f32 %v4015_v55, %v4015_v55  ;;  %v4023_v12 = vadd.f32 %v4018_v52, %v4017_v14 }
 0x4e2   :  { %v4024_v63 = vadd.f32 %v4023_v12, %v4019_v62  ;;  %v4027_v0 = vadd.f32 %v4021_v60, %v4020_v56 }
 0x4e4   :  { %4025 = vadd.xlane.f32.xlu1 %v4024_v63  ;;  %v4028_v2 = vadd.f32 %v4027_v0, %v4022_v1 }
 0x4e8   :  { %4029 = vadd.xlane.f32.xlu1 %v4028_v2 }
 0x571   :  { %v4026_v3 = vpop.xlane.xlu1 %4025 }
 0x572   :  { %v4031_v37 = vmax.f32 %v4026_v3, 1e-24 }
 0x574   :  { %5418 = vrsqrt.f32 %v4031_v37 }
 0x575   :  { %v4030_v4 = vpop.xlane.xlu1 %4029 }
 0x576   :  { %v4032_v6 = vmax.f32 %v4030_v4, 1e-24 }
 0x578   :  { %5420 = vrsqrt.f32 %v4032_v6 }
 0x57e   :  { %v5419_v7 = vpop.eup %5418 }
 0x57f   :  { %v4035_v8 = vmul.f32 %v5419_v7, %v4011_v44  ;;  %v4036_v15 = vmul.f32 %v5419_v7, %v4012_v10  ;;  %v4037_v16 = vmul.f32 %v5419_v7, %v4013_v5 }
 0x581   :  { %v4535_v18 = vpack.c.bf16 %v4037_v16, %v4037_v16  ;;  %v4534_v19 = vpack.c.bf16 %v4036_v15, %v4035_v8 }
 0x582   :  { %v5421_v20 = vpop.eup %5420 }
 0x583   :  { %4063 = vst [vmem:[#allocation10 + $0x20] sm:$0xf] %v4535_v18  ;;  %v4038_v21 = vmul.f32 %v5421_v20, %v4014_v50  ;;  %v4039_v22 = vmul.f32 %v5421_v20, %v4015_v55  ;;  %v4040_v23 = vmul.f32 %v5421_v20, %v4016_v58  ;;  %4062 = vst [vmem:[#allocation10 + $0x18] sm:$0xff] %v4534_v19 }
 0x585   :  { %v4537_v17 = vpack.c.bf16 %v4040_v23, %v4040_v23  ;;  %v4536_v24 = vpack.c.bf16 %v4039_v22, %v4038_v21 }
 0x587   :  { %4065 = vst [vmem:[#allocation10 + $0x2c] sm:$0xf] %v4537_v17  ;;  %4064 = vst [vmem:[#allocation10 + $0x24] sm:$0xff] %v4536_v24 }
 0x588   :  { %5521 = shalt.err (!%p5518_p8)
}
 0x589   :  { %s5522_s0 = scalar_lea.hbm %s5848_s7, 768 }
 0x58a   :  { %p5523_p9 = scmp.ne.s32.totalorder %s5848_s7, %s5522_s0  ;;  %p5526_p10 = scmp.lt.u32.totalorder %s5522_s0, %s5848_s7 }
 0x58c   :  { %p5528_p11 = pnand %p5526_p10, %p5523_p9 }
 0x58e   :  { %5531 = shalt.err (!%p5528_p11)
}
 0x58f   :  { %4077 = dma.vmem_to_hbm [thread:$0]  %s4072_s12, 768, %s5848_s7, [#allocation4], %s5544_s1, %s5544_s1, %s5545_s25  }
 0x590   :  { %5538 = dma.done.wait [#allocation4], 768  }
 0x591   :  { %5539 = vsyncadd [#allocation4], 4294966528 }
 0x592   :  { %4081 = vsyncpa [#allocation3], 1 }
 0x593   :  { %4082 = vsyncpa [#allocation6], 1 }
 0x594   :  { %4083 = vsyncpa [#allocation9], 1 }
 0x595   :  { %4084 = vsyncpa [#allocation4], 1 }

</bundles_post_ra>
